<compile_context>
chip_gen: v7x
topology: tpu7x:2x2x1
jax: 0.10.0
libtpu: 0.0.40
codegen_flags: <defaults>
</compile_context>

<pallas_src>
import functools

import jax
import jax.numpy as jnp
from jax.experimental import pallas as pl
from jax.experimental.pallas import tpu as pltpu

_VMEM_LIMIT = 32 * 1024 * 1024  # explicit scoped-VMEM budget (safe on v5e/v6e/v7x)


def _round_up(x, m):
    return (x + m - 1) // m * m


def _largest_divisor(n, cap):
    c = max(1, min(n, cap))
    while n % c:
        c -= 1
    return c


# --------------------------------------------------------------------------
# Kernel 1: GRU recurrence, streamed over time chunks.
# --------------------------------------------------------------------------
def gru_chunk_kernel(gi_ref, h0_ref, whh_ref, bhn_ref, hs_ref, hfin_ref, hs_scr):
    """One time-chunk of the GRU recurrence.

    The hidden state is carried across chunks inside hfin_ref (constant block
    index -> resident in VMEM across the 'arbitrary' time-chunk axis).

    gi_ref:   (tc*Bp, 3*Hp)  precomputed input gates [r|z|n] for this chunk
    h0_ref:   (Bp, Hp)       initial hidden state (padded)
    whh_ref:  (Hp, 3*Hp)     recurrent weights, one 128-lane block per gate
    bhn_ref:  (1, Hp)        hidden bias of the n gate
    hs_ref:   (tc*Bp, Hp)    out (bf16): this chunk's per-step hidden states
    hfin_ref: (Bp, Hp)       out (f32): hidden-state carry / final hidden
    hs_scr:   (tc*Bp, Hp)    f32 scratch for this chunk's hidden states
    """
    Bp, Hp = hfin_ref.shape
    Tc = hs_scr.shape[0] // Bp

    @pl.when(pl.program_id(0) == 0)
    def _():
        hfin_ref[...] = h0_ref[...]

    # Hoisted: (1,Hp)->(Bp,Hp) broadcast done once, not once per unrolled step.
    bhn = jnp.broadcast_to(bhn_ref[...], (Bp, Hp))

    def step(t, h):
        row = pl.multiple_of(t * Bp, Bp)
        gi = gi_ref[pl.ds(row, Bp), :]                                   # (Bp, 3Hp)
        gh = jnp.dot(h, whh_ref[...], preferred_element_type=jnp.float32)
        r = jax.nn.sigmoid(gi[:, 0:Hp] + gh[:, 0:Hp])
        z = jax.nn.sigmoid(gi[:, Hp:2 * Hp] + gh[:, Hp:2 * Hp])
        n = jnp.tanh(gi[:, 2 * Hp:3 * Hp] + r * (gh[:, 2 * Hp:3 * Hp] + bhn))
        h_new = n + z * (h - n)            # FMA-friendly form of (1-z)*n + z*h
        hs_scr[pl.ds(row, Bp), :] = h_new
        return h_new

    h_last = jax.lax.fori_loop(0, Tc, step, hfin_ref[...], unroll=4)
    hfin_ref[...] = h_last
    hs_ref[...] = hs_scr[...].astype(hs_ref.dtype)


# --------------------------------------------------------------------------
# Kernel 2: per-row logsumexp over vocab tiles (online max / sum).
# --------------------------------------------------------------------------
def lse_kernel(hs_ref, wout_ref, bout_ref, lse_ref, m_scr, l_scr):
    j = pl.program_id(1)

    @pl.when(j == 0)
    def _():
        m_scr[...] = jnp.full_like(m_scr, -jnp.inf)
        l_scr[...] = jnp.zeros_like(l_scr)

    logits = jnp.dot(hs_ref[...], wout_ref[...],
                     preferred_element_type=jnp.float32) + bout_ref[...]
    m_prev = m_scr[...]
    m_new = jnp.maximum(m_prev, jnp.max(logits, axis=-1, keepdims=True))
    l_scr[...] = (l_scr[...] * jnp.exp(m_prev - m_new)
                  + jnp.sum(jnp.exp(logits - m_new), axis=-1, keepdims=True))
    m_scr[...] = m_new

    @pl.when(j == pl.num_programs(1) - 1)
    def _():
        lse_ref[...] = m_scr[...] + jnp.log(l_scr[...])


# --------------------------------------------------------------------------
# Kernel 3: recompute logits per tile and write lane-dense log-probs.
# --------------------------------------------------------------------------
def logp_kernel(hs_ref, wout_ref, bout_ref, lse_ref, logp_ref):
    logits = jnp.dot(hs_ref[...], wout_ref[...],
                     preferred_element_type=jnp.float32) + bout_ref[...]
    logp_ref[...] = (logits - lse_ref[...]).astype(logp_ref.dtype)


# --------------------------------------------------------------------------
# One-time weight packing (padded, per-gate 128-lane blocks, bf16 W_out^T).
# --------------------------------------------------------------------------
def pack_decoder_params(w_ih, w_hh, b_ih, b_hh, w_out, b_out):
    f32 = jnp.float32
    H = w_hh.shape[1]
    V = w_out.shape[0]
    I = w_ih.shape[1]
    Hp = _round_up(H, 128)
    Vp = _round_up(V, 128)

    w_ih = jnp.asarray(w_ih, f32)
    w_hh = jnp.asarray(w_hh, f32)
    b_ih = jnp.asarray(b_ih, f32)
    b_hh = jnp.asarray(b_hh, f32)
    w_out = jnp.asarray(w_out, f32)
    b_out = jnp.asarray(b_out, f32)

    w_ir, w_iz, w_in = w_ih[:H], w_ih[H:2 * H], w_ih[2 * H:]
    w_hr, w_hz, w_hn = w_hh[:H], w_hh[H:2 * H], w_hh[2 * H:]
    b_ir, b_iz, b_in = b_ih[:H], b_ih[H:2 * H], b_ih[2 * H:]
    b_hr, b_hz, b_hn = b_hh[:H], b_hh[H:2 * H], b_hh[2 * H:]

    # Input-projection weights: one 128-lane block per gate.  The r/z hidden
    # biases are folded into the input bias (only b_hn must stay inside
    # r * (W_hn h + b_hn)).
    wih = jnp.zeros((I, 3 * Hp), f32)
    wih = wih.at[:, 0 * Hp:0 * Hp + H].set(w_ir.T)
    wih = wih.at[:, 1 * Hp:1 * Hp + H].set(w_iz.T)
    wih = wih.at[:, 2 * Hp:2 * Hp + H].set(w_in.T)
    bih = jnp.zeros((1, 3 * Hp), f32)
    bih = bih.at[0, 0 * Hp:0 * Hp + H].set(b_ir + b_hr)
    bih = bih.at[0, 1 * Hp:1 * Hp + H].set(b_iz + b_hz)
    bih = bih.at[0, 2 * Hp:2 * Hp + H].set(b_in)

    whh = jnp.zeros((Hp, 3 * Hp), f32)
    whh = whh.at[:H, 0 * Hp:0 * Hp + H].set(w_hr.T)
    whh = whh.at[:H, 1 * Hp:1 * Hp + H].set(w_hz.T)
    whh = whh.at[:H, 2 * Hp:2 * Hp + H].set(w_hn.T)
    bhn = jnp.zeros((1, Hp), f32).at[0, :H].set(b_hn)

    # Output projection in bf16 (MXU throughput, half the W_out DMA bytes);
    # padded vocab lanes get a -1e30 bias so they never win the softmax.
    wout = jnp.zeros((Hp, Vp), jnp.bfloat16).at[:H, :V].set(
        w_out.T.astype(jnp.bfloat16))
    bout = jnp.full((1, Vp), -1e30, f32).at[0, :V].set(b_out)

    params = dict(wih=wih, bih=bih, whh=whh, bhn=bhn, wout=wout, bout=bout)
    dims = (H, V)
    return params, dims


# --------------------------------------------------------------------------
# Per-call forward (jitted; weights are already packed).
# --------------------------------------------------------------------------
@functools.partial(jax.jit, static_argnames=("dims", "tc", "tn"))
def decoder_forward(params, word_embedding, prev_hidden, *, dims, tc=None, tn=None):
    """Forward pass of the PyTorch Decoder (1-layer GRU -> Linear -> LogSoftmax).

    word_embedding: (T, B, I)  time-major (nn.GRU default layout)
    prev_hidden:    (1, B, H)
    Returns (log_probs (T, B, V), hidden (1, B, H)).
    """
    f32 = jnp.float32
    H, V = dims
    T, B, _ = word_embedding.shape
    Hp = _round_up(H, 128)
    Vp = _round_up(V, 128)
    Bp = _round_up(max(B, 8), 8)

    # Time chunk (recurrence grid step / projection row tile) and vocab tile.
    if tc is None:
        tc = _largest_divisor(T, max(1, 512 // Bp))
        if (tc * Bp) % 16 and tc != T:   # keep the bf16 hs block 16-sublane aligned
            tc = T
    if tn is None:
        tn = 128 * _largest_divisor(Vp // 128, 4)
    assert T % tc == 0 and Vp % tn == 0

    rows = T * Bp
    tm = tc * Bp

    # ---- Hoisted input projection for all timesteps (no serial dependence),
    #      one fused matmul into the pre-packed (I, 3*Hp) weight. ----
    x = word_embedding.astype(f32)
    x = jnp.pad(x, ((0, 0), (0, Bp - B), (0, 0))).reshape(rows, -1)
    gi = x @ params["wih"] + params["bih"]                       # (rows, 3*Hp)

    h0 = jnp.zeros((Bp, Hp), f32).at[:B, :H].set(prev_hidden[0].astype(f32))

    # ---- GRU recurrence, streamed over time chunks. ----
    hs, hfin = pl.pallas_call(
        gru_chunk_kernel,
        out_shape=(jax.ShapeDtypeStruct((rows, Hp), jnp.bfloat16),
                   jax.ShapeDtypeStruct((Bp, Hp), f32)),
        grid_spec=pltpu.PrefetchScalarGridSpec(
            num_scalar_prefetch=0,
            grid=(T // tc,),
            in_specs=[
                pl.BlockSpec((tm, 3 * Hp), lambda c: (c, 0)),    # gi chunk
                pl.BlockSpec((Bp, Hp), lambda c: (0, 0)),        # h0
                pl.BlockSpec((Hp, 3 * Hp), lambda c: (0, 0)),    # W_hh (per gate)
                pl.BlockSpec((1, Hp), lambda c: (0, 0)),         # b_hn
            ],
            out_specs=(
                pl.BlockSpec((tm, Hp), lambda c: (c, 0)),        # hidden states
                pl.BlockSpec((Bp, Hp), lambda c: (0, 0)),        # carry / final h
            ),
            scratch_shapes=[pltpu.VMEM((tm, Hp), f32)],
        ),
        compiler_params=pltpu.CompilerParams(
            dimension_semantics=("arbitrary",),
            vmem_limit_bytes=_VMEM_LIMIT),
    )(gi, h0, params["whh"], params["bhn"])

    n_row, n_voc = rows // tm, Vp // tn

    # ---- Pass 1: per-row logsumexp over vocab tiles (online max/sum). ----
    lse = pl.pallas_call(
        lse_kernel,
        out_shape=jax.ShapeDtypeStruct((rows, 1), f32),
        grid_spec=pltpu.PrefetchScalarGridSpec(
            num_scalar_prefetch=0,
            grid=(n_row, n_voc),
            in_specs=[
                pl.BlockSpec((tm, Hp), lambda i, j: (i, 0)),     # hidden states
                pl.BlockSpec((Hp, tn), lambda i, j: (0, j)),     # W_out tile
                pl.BlockSpec((1, tn), lambda i, j: (0, j)),      # b_out tile
            ],
            out_specs=pl.BlockSpec((tm, 1), lambda i, j: (i, 0)),
            scratch_shapes=[pltpu.VMEM((tm, 1), f32),            # running max
                            pltpu.VMEM((tm, 1), f32)],           # running sum
        ),
        compiler_params=pltpu.CompilerParams(
            dimension_semantics=("parallel", "arbitrary"),
            vmem_limit_bytes=_VMEM_LIMIT),
    )(hs, params["wout"], params["bout"])

    # ---- Pass 2: recompute logits per tile, write lane-dense log-probs. ----
    logp = pl.pallas_call(
        logp_kernel,
        out_shape=jax.ShapeDtypeStruct((rows, Vp), f32),
        grid_spec=pltpu.PrefetchScalarGridSpec(
            num_scalar_prefetch=0,
            grid=(n_row, n_voc),
            in_specs=[
                pl.BlockSpec((tm, Hp), lambda i, j: (i, 0)),
                pl.BlockSpec((Hp, tn), lambda i, j: (0, j)),
                pl.BlockSpec((1, tn), lambda i, j: (0, j)),
                pl.BlockSpec((tm, 1), lambda i, j: (i, 0)),
            ],
            out_specs=pl.BlockSpec((tm, tn), lambda i, j: (i, j)),
        ),
        compiler_params=pltpu.CompilerParams(
            dimension_semantics=("parallel", "parallel"),
            vmem_limit_bytes=_VMEM_LIMIT),
    )(hs, params["wout"], params["bout"], lse)

    logp = logp.reshape(T, Bp, Vp)[:, :B, :V].astype(word_embedding.dtype)
    hidden = hfin[:B, :H][None].astype(prev_hidden.dtype)
    return logp, hidden


def decoder_reference(x, h0, w_ih, w_hh, b_ih, b_hh, w_out, b_out):
    """Pure-JAX reference of the Decoder forward (GRU -> Linear -> LogSoftmax)."""
    H = h0.shape[-1]

    def step(h, x_t):
        gi = x_t @ w_ih.T + b_ih
        gh = h @ w_hh.T + b_hh
        i_r, i_z, i_n = gi[:, :H], gi[:, H:2 * H], gi[:, 2 * H:]
        h_r, h_z, h_n = gh[:, :H], gh[:, H:2 * H], gh[:, 2 * H:]
        r = jax.nn.sigmoid(i_r + h_r)
        z = jax.nn.sigmoid(i_z + h_z)
        n = jnp.tanh(i_n + r * h_n)
        h_new = (1.0 - z) * n + z * h
        return h_new, h_new

    h_last, outs = jax.lax.scan(step, h0[0], x)
    logits = outs @ w_out.T + b_out
    logp = jax.nn.log_softmax(logits, axis=-1)
    return logp, h_last[None]


if __name__ == "__main__":
    T, B, I, H = 8, 4, 16, 32   # seq_len, batch, input_size, hidden_size
    V = 200                     # stand-in for len(w2v.index_to_key)

    key = jax.random.PRNGKey(0)
    ks = jax.random.split(key, 8)

    bound = 1.0 / jnp.sqrt(jnp.float32(H))
    w_ih = jax.random.uniform(ks[0], (3 * H, I), jnp.float32, -bound, bound)
    w_hh = jax.random.uniform(ks[1], (3 * H, H), jnp.float32, -bound, bound)
    b_ih = jax.random.uniform(ks[2], (3 * H,), jnp.float32, -bound, bound)
    b_hh = jax.random.uniform(ks[3], (3 * H,), jnp.float32, -bound, bound)
    w_out = jax.random.uniform(ks[4], (V, H), jnp.float32, -bound, bound)
    b_out = jax.random.uniform(ks[5], (V,), jnp.float32, -bound, bound)

    word_embedding = jax.random.normal(ks[6], (T, B, I), jnp.float32)
    prev_hidden = jax.random.normal(ks[7], (1, B, H), jnp.float32)

    params, dims = pack_decoder_params(w_ih, w_hh, b_ih, b_hh, w_out, b_out)

    # tc=4 / tn=128 so the test exercises multiple time chunks and vocab tiles.
    logp, hidden = decoder_forward(params, word_embedding, prev_hidden,
                                   dims=dims, tc=4, tn=128)
    logp = jax.block_until_ready(logp)
    hidden = jax.block_until_ready(hidden)

    logp_ref, hidden_ref = decoder_reference(word_embedding, prev_hidden,
                                             w_ih, w_hh, b_ih, b_hh,
                                             w_out, b_out)

    assert logp.shape == (T, B, V) and hidden.shape == (1, B, H)
    # Hidden state is computed entirely in f32.
    assert jnp.allclose(hidden, hidden_ref, atol=1e-4, rtol=1e-4), (
        float(jnp.max(jnp.abs(hidden - hidden_ref))))
    # Projection operands are bf16 -> looser tolerance on the log-probs.
    assert jnp.allclose(logp, logp_ref, atol=5e-2, rtol=1e-2), (
        float(jnp.max(jnp.abs(logp - logp_ref))))

    print("KERNEL_OK")
</pallas_src>

<mosaic_0001>
module attributes {stable_mosaic.version = 11 : i64} {
  func.func @gru_chunk_kernel(%arg0: i32, %arg1: memref<32x384xf32, #tpu.memory_space<vmem>>, %arg2: memref<8x128xf32, #tpu.memory_space<vmem>>, %arg3: memref<128x384xf32, #tpu.memory_space<vmem>>, %arg4: memref<1x128xf32, #tpu.memory_space<vmem>>, %arg5: memref<32x128xbf16, #tpu.memory_space<vmem>>, %arg6: memref<8x128xf32, #tpu.memory_space<vmem>>, %arg7: memref<32x128xf32, #tpu.memory_space<vmem>>) attributes {dimension_semantics = [#tpu.dimension_semantics<arbitrary>], iteration_bounds = array<i64: 2>, scalar_prefetch = 0 : i64, scratch_operands = 1 : i64, tpu.core_type = #tpu.core_type<tc>, window_params = [{transform_indices = @transform_0, window_bounds = array<i64: 32, 384>}, {pipeline_mode = #tpu.pipeline_mode<synchronous>, transform_indices = @transform_1, window_bounds = array<i64: 8, 128>}, {pipeline_mode = #tpu.pipeline_mode<synchronous>, transform_indices = @transform_2, window_bounds = array<i64: 128, 384>}, {pipeline_mode = #tpu.pipeline_mode<synchronous>, transform_indices = @transform_3, window_bounds = array<i64: 1, 128>}, {transform_indices = @transform_4, window_bounds = array<i64: 32, 128>}, {pipeline_mode = #tpu.pipeline_mode<synchronous>, transform_indices = @transform_5, window_bounds = array<i64: 8, 128>}]} {
    %c0_i32 = arith.constant 0 : i32
    %0 = arith.cmpi eq, %arg0, %c0_i32 : i32
    %1 = arith.extui %0 : i1 to i32
    %c0_i32_0 = arith.constant 0 : i32
    %2 = arith.cmpi ne, %1, %c0_i32_0 : i32
    scf.if %2 {
      %c0_41 = arith.constant 0 : index
      %c0_42 = arith.constant 0 : index
      %143 = vector.load %arg2[%c0_41, %c0_42] : memref<8x128xf32, #tpu.memory_space<vmem>>, vector<8x128xf32>
      %c0_43 = arith.constant 0 : index
      %c0_44 = arith.constant 0 : index
      %144 = vector.load %arg6[%c0_43, %c0_44] : memref<8x128xf32, #tpu.memory_space<vmem>>, vector<8x128xf32>
      tpu.vector_store %arg6[%c0_43, %c0_44], %143 {strides = array<i32>} : memref<8x128xf32, #tpu.memory_space<vmem>>, vector<8x128xf32>,
    } else {
    }
    %c0 = arith.constant 0 : index
    %c0_1 = arith.constant 0 : index
    %3 = vector.load %arg4[%c0, %c0_1] : memref<1x128xf32, #tpu.memory_space<vmem>>, vector<1x128xf32>
    %4 = vector.shape_cast %3 : vector<1x128xf32> to vector<1x128xf32>
    %5 = vector.broadcast %4 : vector<1x128xf32> to vector<8x128xf32>
    %c0_2 = arith.constant 0 : index
    %c0_3 = arith.constant 0 : index
    %6 = vector.load %arg6[%c0_2, %c0_3] : memref<8x128xf32, #tpu.memory_space<vmem>>, vector<8x128xf32>
    %c0_i32_4 = arith.constant 0 : i32
    %c8_i32 = arith.constant 8 : i32
    %7 = arith.muli %c0_i32_4, %c8_i32 : i32
    %8 = tpu.assume_multiple %7, 8 : i32
    %9 = arith.index_cast %8 : i32 to index
    %c0_5 = arith.constant 0 : index
    %10 = vector.load %arg1[%9, %c0_5] : memref<32x384xf32, #tpu.memory_space<vmem>>, vector<8x384xf32>
    %c0_6 = arith.constant 0 : index
    %c0_7 = arith.constant 0 : index
    %11 = vector.load %arg3[%c0_6, %c0_7] : memref<128x384xf32, #tpu.memory_space<vmem>>, vector<128x384xf32>
    %cst = arith.constant dense<0.000000e+00> : vector<8x384xf32>
    %12 = tpu.matmul %6, %11, %cst {dimension_numbers = #tpu.dot_dimension_numbers<[1], [0], [0], [1], [0, 0, 1, 1], [], []>} : vector<8x128xf32>, vector<128x384xf32>, vector<8x384xf32> -> vector<8x384xf32>
    %13 = vector.extract_strided_slice %10 {offsets = [0, 0], sizes = [8, 128], strides = [1, 1]} : vector<8x384xf32> to vector<8x128xf32>
    %14 = vector.extract_strided_slice %12 {offsets = [0, 0], sizes = [8, 128], strides = [1, 1]} : vector<8x384xf32> to vector<8x128xf32>
    %15 = arith.addf %13, %14 : vector<8x128xf32>
    %16 = arith.negf %15 : vector<8x128xf32>
    %17 = math.exp %16 : vector<8x128xf32>
    %cst_8 = arith.constant 1.000000e+00 : f32
    %18 = vector.broadcast %cst_8 : f32 to vector<8x128xf32>
    %19 = arith.addf %18, %17 : vector<8x128xf32>
    %20 = arith.divf %18, %19 : vector<8x128xf32>
    %21 = vector.extract_strided_slice %10 {offsets = [0, 128], sizes = [8, 128], strides = [1, 1]} : vector<8x384xf32> to vector<8x128xf32>
    %22 = vector.extract_strided_slice %12 {offsets = [0, 128], sizes = [8, 128], strides = [1, 1]} : vector<8x384xf32> to vector<8x128xf32>
    %23 = arith.addf %21, %22 : vector<8x128xf32>
    %24 = arith.negf %23 : vector<8x128xf32>
    %25 = math.exp %24 : vector<8x128xf32>
    %cst_9 = arith.constant 1.000000e+00 : f32
    %26 = vector.broadcast %cst_9 : f32 to vector<8x128xf32>
    %27 = arith.addf %26, %25 : vector<8x128xf32>
    %28 = arith.divf %26, %27 : vector<8x128xf32>
    %29 = vector.extract_strided_slice %10 {offsets = [0, 256], sizes = [8, 128], strides = [1, 1]} : vector<8x384xf32> to vector<8x128xf32>
    %30 = vector.extract_strided_slice %12 {offsets = [0, 256], sizes = [8, 128], strides = [1, 1]} : vector<8x384xf32> to vector<8x128xf32>
    %31 = arith.addf %30, %5 : vector<8x128xf32>
    %32 = arith.mulf %20, %31 : vector<8x128xf32>
    %33 = arith.addf %29, %32 : vector<8x128xf32>
    %34 = math.tanh %33 : vector<8x128xf32>
    %35 = arith.subf %6, %34 : vector<8x128xf32>
    %36 = arith.mulf %28, %35 : vector<8x128xf32>
    %37 = arith.addf %34, %36 : vector<8x128xf32>
    %38 = arith.index_cast %8 : i32 to index
    %c0_10 = arith.constant 0 : index
    %39 = vector.load %arg7[%38, %c0_10] : memref<32x128xf32, #tpu.memory_space<vmem>>, vector<8x128xf32>
    tpu.vector_store %arg7[%38, %c0_10], %37 {strides = array<i32>} : memref<32x128xf32, #tpu.memory_space<vmem>>, vector<8x128xf32>,
    %c1_i32 = arith.constant 1 : i32
    %c8_i32_11 = arith.constant 8 : i32
    %40 = arith.muli %c1_i32, %c8_i32_11 : i32
    %41 = tpu.assume_multiple %40, 8 : i32
    %42 = arith.index_cast %41 : i32 to index
    %c0_12 = arith.constant 0 : index
    %43 = vector.load %arg1[%42, %c0_12] : memref<32x384xf32, #tpu.memory_space<vmem>>, vector<8x384xf32>
    %c0_13 = arith.constant 0 : index
    %c0_14 = arith.constant 0 : index
    %44 = vector.load %arg3[%c0_13, %c0_14] : memref<128x384xf32, #tpu.memory_space<vmem>>, vector<128x384xf32>
    %cst_15 = arith.constant dense<0.000000e+00> : vector<8x384xf32>
    %45 = tpu.matmul %37, %44, %cst_15 {dimension_numbers = #tpu.dot_dimension_numbers<[1], [0], [0], [1], [0, 0, 1, 1], [], []>} : vector<8x128xf32>, vector<128x384xf32>, vector<8x384xf32> -> vector<8x384xf32>
    %46 = vector.extract_strided_slice %43 {offsets = [0, 0], sizes = [8, 128], strides = [1, 1]} : vector<8x384xf32> to vector<8x128xf32>
    %47 = vector.extract_strided_slice %45 {offsets = [0, 0], sizes = [8, 128], strides = [1, 1]} : vector<8x384xf32> to vector<8x128xf32>
    %48 = arith.addf %46, %47 : vector<8x128xf32>
    %49 = arith.negf %48 : vector<8x128xf32>
    %50 = math.exp %49 : vector<8x128xf32>
    %cst_16 = arith.constant 1.000000e+00 : f32
    %51 = vector.broadcast %cst_16 : f32 to vector<8x128xf32>
    %52 = arith.addf %51, %50 : vector<8x128xf32>
    %53 = arith.divf %51, %52 : vector<8x128xf32>
    %54 = vector.extract_strided_slice %43 {offsets = [0, 128], sizes = [8, 128], strides = [1, 1]} : vector<8x384xf32> to vector<8x128xf32>
    %55 = vector.extract_strided_slice %45 {offsets = [0, 128], sizes = [8, 128], strides = [1, 1]} : vector<8x384xf32> to vector<8x128xf32>
    %56 = arith.addf %54, %55 : vector<8x128xf32>
    %57 = arith.negf %56 : vector<8x128xf32>
    %58 = math.exp %57 : vector<8x128xf32>
    %cst_17 = arith.constant 1.000000e+00 : f32
    %59 = vector.broadcast %cst_17 : f32 to vector<8x128xf32>
    %60 = arith.addf %59, %58 : vector<8x128xf32>
    %61 = arith.divf %59, %60 : vector<8x128xf32>
    %62 = vector.extract_strided_slice %43 {offsets = [0, 256], sizes = [8, 128], strides = [1, 1]} : vector<8x384xf32> to vector<8x128xf32>
    %63 = vector.extract_strided_slice %45 {offsets = [0, 256], sizes = [8, 128], strides = [1, 1]} : vector<8x384xf32> to vector<8x128xf32>
    %64 = arith.addf %63, %5 : vector<8x128xf32>
    %65 = arith.mulf %53, %64 : vector<8x128xf32>
    %66 = arith.addf %62, %65 : vector<8x128xf32>
    %67 = math.tanh %66 : vector<8x128xf32>
    %68 = arith.subf %37, %67 : vector<8x128xf32>
    %69 = arith.mulf %61, %68 : vector<8x128xf32>
    %70 = arith.addf %67, %69 : vector<8x128xf32>
    %71 = arith.index_cast %41 : i32 to index
    %c0_18 = arith.constant 0 : index
    %72 = vector.load %arg7[%71, %c0_18] : memref<32x128xf32, #tpu.memory_space<vmem>>, vector<8x128xf32>
    tpu.vector_store %arg7[%71, %c0_18], %70 {strides = array<i32>} : memref<32x128xf32, #tpu.memory_space<vmem>>, vector<8x128xf32>,
    %c2_i32 = arith.constant 2 : i32
    %c8_i32_19 = arith.constant 8 : i32
    %73 = arith.muli %c2_i32, %c8_i32_19 : i32
    %74 = tpu.assume_multiple %73, 8 : i32
    %75 = arith.index_cast %74 : i32 to index
    %c0_20 = arith.constant 0 : index
    %76 = vector.load %arg1[%75, %c0_20] : memref<32x384xf32, #tpu.memory_space<vmem>>, vector<8x384xf32>
    %c0_21 = arith.constant 0 : index
    %c0_22 = arith.constant 0 : index
    %77 = vector.load %arg3[%c0_21, %c0_22] : memref<128x384xf32, #tpu.memory_space<vmem>>, vector<128x384xf32>
    %cst_23 = arith.constant dense<0.000000e+00> : vector<8x384xf32>
    %78 = tpu.matmul %70, %77, %cst_23 {dimension_numbers = #tpu.dot_dimension_numbers<[1], [0], [0], [1], [0, 0, 1, 1], [], []>} : vector<8x128xf32>, vector<128x384xf32>, vector<8x384xf32> -> vector<8x384xf32>
    %79 = vector.extract_strided_slice %76 {offsets = [0, 0], sizes = [8, 128], strides = [1, 1]} : vector<8x384xf32> to vector<8x128xf32>
    %80 = vector.extract_strided_slice %78 {offsets = [0, 0], sizes = [8, 128], strides = [1, 1]} : vector<8x384xf32> to vector<8x128xf32>
    %81 = arith.addf %79, %80 : vector<8x128xf32>
    %82 = arith.negf %81 : vector<8x128xf32>
    %83 = math.exp %82 : vector<8x128xf32>
    %cst_24 = arith.constant 1.000000e+00 : f32
    %84 = vector.broadcast %cst_24 : f32 to vector<8x128xf32>
    %85 = arith.addf %84, %83 : vector<8x128xf32>
    %86 = arith.divf %84, %85 : vector<8x128xf32>
    %87 = vector.extract_strided_slice %76 {offsets = [0, 128], sizes = [8, 128], strides = [1, 1]} : vector<8x384xf32> to vector<8x128xf32>
    %88 = vector.extract_strided_slice %78 {offsets = [0, 128], sizes = [8, 128], strides = [1, 1]} : vector<8x384xf32> to vector<8x128xf32>
    %89 = arith.addf %87, %88 : vector<8x128xf32>
    %90 = arith.negf %89 : vector<8x128xf32>
    %91 = math.exp %90 : vector<8x128xf32>
    %cst_25 = arith.constant 1.000000e+00 : f32
    %92 = vector.broadcast %cst_25 : f32 to vector<8x128xf32>
    %93 = arith.addf %92, %91 : vector<8x128xf32>
    %94 = arith.divf %92, %93 : vector<8x128xf32>
    %95 = vector.extract_strided_slice %76 {offsets = [0, 256], sizes = [8, 128], strides = [1, 1]} : vector<8x384xf32> to vector<8x128xf32>
    %96 = vector.extract_strided_slice %78 {offsets = [0, 256], sizes = [8, 128], strides = [1, 1]} : vector<8x384xf32> to vector<8x128xf32>
    %97 = arith.addf %96, %5 : vector<8x128xf32>
    %98 = arith.mulf %86, %97 : vector<8x128xf32>
    %99 = arith.addf %95, %98 : vector<8x128xf32>
    %100 = math.tanh %99 : vector<8x128xf32>
    %101 = arith.subf %70, %100 : vector<8x128xf32>
    %102 = arith.mulf %94, %101 : vector<8x128xf32>
    %103 = arith.addf %100, %102 : vector<8x128xf32>
    %104 = arith.index_cast %74 : i32 to index
    %c0_26 = arith.constant 0 : index
    %105 = vector.load %arg7[%104, %c0_26] : memref<32x128xf32, #tpu.memory_space<vmem>>, vector<8x128xf32>
    tpu.vector_store %arg7[%104, %c0_26], %103 {strides = array<i32>} : memref<32x128xf32, #tpu.memory_space<vmem>>, vector<8x128xf32>,
    %c3_i32 = arith.constant 3 : i32
    %c8_i32_27 = arith.constant 8 : i32
    %106 = arith.muli %c3_i32, %c8_i32_27 : i32
    %107 = tpu.assume_multiple %106, 8 : i32
    %108 = arith.index_cast %107 : i32 to index
    %c0_28 = arith.constant 0 : index
    %109 = vector.load %arg1[%108, %c0_28] : memref<32x384xf32, #tpu.memory_space<vmem>>, vector<8x384xf32>
    %c0_29 = arith.constant 0 : index
    %c0_30 = arith.constant 0 : index
    %110 = vector.load %arg3[%c0_29, %c0_30] : memref<128x384xf32, #tpu.memory_space<vmem>>, vector<128x384xf32>
    %cst_31 = arith.constant dense<0.000000e+00> : vector<8x384xf32>
    %111 = tpu.matmul %103, %110, %cst_31 {dimension_numbers = #tpu.dot_dimension_numbers<[1], [0], [0], [1], [0, 0, 1, 1], [], []>} : vector<8x128xf32>, vector<128x384xf32>, vector<8x384xf32> -> vector<8x384xf32>
    %112 = vector.extract_strided_slice %109 {offsets = [0, 0], sizes = [8, 128], strides = [1, 1]} : vector<8x384xf32> to vector<8x128xf32>
    %113 = vector.extract_strided_slice %111 {offsets = [0, 0], sizes = [8, 128], strides = [1, 1]} : vector<8x384xf32> to vector<8x128xf32>
    %114 = arith.addf %112, %113 : vector<8x128xf32>
    %115 = arith.negf %114 : vector<8x128xf32>
    %116 = math.exp %115 : vector<8x128xf32>
    %cst_32 = arith.constant 1.000000e+00 : f32
    %117 = vector.broadcast %cst_32 : f32 to vector<8x128xf32>
    %118 = arith.addf %117, %116 : vector<8x128xf32>
    %119 = arith.divf %117, %118 : vector<8x128xf32>
    %120 = vector.extract_strided_slice %109 {offsets = [0, 128], sizes = [8, 128], strides = [1, 1]} : vector<8x384xf32> to vector<8x128xf32>
    %121 = vector.extract_strided_slice %111 {offsets = [0, 128], sizes = [8, 128], strides = [1, 1]} : vector<8x384xf32> to vector<8x128xf32>
    %122 = arith.addf %120, %121 : vector<8x128xf32>
    %123 = arith.negf %122 : vector<8x128xf32>
    %124 = math.exp %123 : vector<8x128xf32>
    %cst_33 = arith.constant 1.000000e+00 : f32
    %125 = vector.broadcast %cst_33 : f32 to vector<8x128xf32>
    %126 = arith.addf %125, %124 : vector<8x128xf32>
    %127 = arith.divf %125, %126 : vector<8x128xf32>
    %128 = vector.extract_strided_slice %109 {offsets = [0, 256], sizes = [8, 128], strides = [1, 1]} : vector<8x384xf32> to vector<8x128xf32>
    %129 = vector.extract_strided_slice %111 {offsets = [0, 256], sizes = [8, 128], strides = [1, 1]} : vector<8x384xf32> to vector<8x128xf32>
    %130 = arith.addf %129, %5 : vector<8x128xf32>
    %131 = arith.mulf %119, %130 : vector<8x128xf32>
    %132 = arith.addf %128, %131 : vector<8x128xf32>
    %133 = math.tanh %132 : vector<8x128xf32>
    %134 = arith.subf %103, %133 : vector<8x128xf32>
    %135 = arith.mulf %127, %134 : vector<8x128xf32>
    %136 = arith.addf %133, %135 : vector<8x128xf32>
    %137 = arith.index_cast %107 : i32 to index
    %c0_34 = arith.constant 0 : index
    %138 = vector.load %arg7[%137, %c0_34] : memref<32x128xf32, #tpu.memory_space<vmem>>, vector<8x128xf32>
    tpu.vector_store %arg7[%137, %c0_34], %136 {strides = array<i32>} : memref<32x128xf32, #tpu.memory_space<vmem>>, vector<8x128xf32>,
    %c4_i32 = arith.constant 4 : i32
    %c0_35 = arith.constant 0 : index
    %c0_36 = arith.constant 0 : index
    %139 = vector.load %arg6[%c0_35, %c0_36] : memref<8x128xf32, #tpu.memory_space<vmem>>, vector<8x128xf32>
    tpu.vector_store %arg6[%c0_35, %c0_36], %136 {strides = array<i32>} : memref<8x128xf32, #tpu.memory_space<vmem>>, vector<8x128xf32>,
    %c0_37 = arith.constant 0 : index
    %c0_38 = arith.constant 0 : index
    %140 = vector.load %arg7[%c0_37, %c0_38] : memref<32x128xf32, #tpu.memory_space<vmem>>, vector<32x128xf32>
    %141 = arith.truncf %140 : vector<32x128xf32> to vector<32x128xbf16>
    %c0_39 = arith.constant 0 : index
    %c0_40 = arith.constant 0 : index
    %142 = vector.load %arg5[%c0_39, %c0_40] : memref<32x128xbf16, #tpu.memory_space<vmem>>, vector<32x128xbf16>
    tpu.vector_store %arg5[%c0_39, %c0_40], %141 {strides = array<i32>} : memref<32x128xbf16, #tpu.memory_space<vmem>>, vector<32x128xbf16>,
    return
  }
  func.func @transform_0(%arg0: i32) -> (i32, i32) {
    %c0_i32 = arith.constant 0 : i32
    %c0_i32_0 = arith.constant 0 : i32
    return %arg0, %c0_i32 : i32, i32
  }
  func.func @transform_1(%arg0: i32) -> (i32, i32) {
    %c0_i32 = arith.constant 0 : i32
    %c0_i32_0 = arith.constant 0 : i32
    %c0_i32_1 = arith.constant 0 : i32
    return %c0_i32, %c0_i32_0 : i32, i32
  }
  func.func @transform_2(%arg0: i32) -> (i32, i32) {
    %c0_i32 = arith.constant 0 : i32
    %c0_i32_0 = arith.constant 0 : i32
    %c0_i32_1 = arith.constant 0 : i32
    return %c0_i32, %c0_i32_0 : i32, i32
  }
  func.func @transform_3(%arg0: i32) -> (i32, i32) {
    %c0_i32 = arith.constant 0 : i32
    %c0_i32_0 = arith.constant 0 : i32
    %c0_i32_1 = arith.constant 0 : i32
    return %c0_i32, %c0_i32_0 : i32, i32
  }
  func.func @transform_4(%arg0: i32) -> (i32, i32) {
    %c0_i32 = arith.constant 0 : i32
    %c0_i32_0 = arith.constant 0 : i32
    return %arg0, %c0_i32 : i32, i32
  }
  func.func @transform_5(%arg0: i32) -> (i32, i32) {
    %c0_i32 = arith.constant 0 : i32
    %c0_i32_0 = arith.constant 0 : i32
    %c0_i32_1 = arith.constant 0 : i32
    return %c0_i32, %c0_i32_0 : i32, i32
  }
}

module attributes {stable_mosaic.version = 11 : i64} {
  func.func @logp_kernel(%arg0: i32, %arg1: i32, %arg2: memref<32x128xbf16, #tpu.memory_space<vmem>>, %arg3: memref<128x128xbf16, #tpu.memory_space<vmem>>, %arg4: memref<1x128xf32, #tpu.memory_space<vmem>>, %arg5: memref<32x1xf32, #tpu.memory_space<vmem>>, %arg6: memref<32x128xf32, #tpu.memory_space<vmem>>) attributes {dimension_semantics = [#tpu.dimension_semantics<parallel>, #tpu.dimension_semantics<parallel>], iteration_bounds = array<i64: 2, 2>, scalar_prefetch = 0 : i64, scratch_operands = 0 : i64, tpu.core_type = #tpu.core_type<tc>, window_params = [{transform_indices = @transform_0, window_bounds = array<i64: 32, 128>}, {transform_indices = @transform_1, window_bounds = array<i64: 128, 128>}, {transform_indices = @transform_2, window_bounds = array<i64: 1, 128>}, {transform_indices = @transform_3, window_bounds = array<i64: 32, 1>}, {transform_indices = @transform_4, window_bounds = array<i64: 32, 128>}]} {
    %c0 = arith.constant 0 : index
    %c0_0 = arith.constant 0 : index
    %0 = vector.load %arg2[%c0, %c0_0] : memref<32x128xbf16, #tpu.memory_space<vmem>>, vector<32x128xbf16>
    %c0_1 = arith.constant 0 : index
    %c0_2 = arith.constant 0 : index
    %1 = vector.load %arg3[%c0_1, %c0_2] : memref<128x128xbf16, #tpu.memory_space<vmem>>, vector<128x128xbf16>
    %cst = arith.constant dense<0.000000e+00> : vector<32x128xf32>
    %2 = tpu.matmul %0, %1, %cst {dimension_numbers = #tpu.dot_dimension_numbers<[1], [0], [0], [1], [0, 0, 1, 1], [], []>} : vector<32x128xbf16>, vector<128x128xbf16>, vector<32x128xf32> -> vector<32x128xf32>
    %c0_3 = arith.constant 0 : index
    %c0_4 = arith.constant 0 : index
    %3 = vector.load %arg4[%c0_3, %c0_4] : memref<1x128xf32, #tpu.memory_space<vmem>>, vector<1x128xf32>
    %4 = vector.broadcast %3 : vector<1x128xf32> to vector<32x128xf32>
    %5 = arith.addf %2, %4 : vector<32x128xf32>
    %c0_5 = arith.constant 0 : index
    %c0_6 = arith.constant 0 : index
    %6 = vector.load %arg5[%c0_5, %c0_6] : memref<32x1xf32, #tpu.memory_space<vmem>>, vector<32x1xf32>
    %7 = vector.broadcast %6 : vector<32x1xf32> to vector<32x128xf32>
    %8 = arith.subf %5, %7 : vector<32x128xf32>
    %c0_7 = arith.constant 0 : index
    %c0_8 = arith.constant 0 : index
    %9 = vector.load %arg6[%c0_7, %c0_8] : memref<32x128xf32, #tpu.memory_space<vmem>>, vector<32x128xf32>
    tpu.vector_store %arg6[%c0_7, %c0_8], %8 {strides = array<i32>} : memref<32x128xf32, #tpu.memory_space<vmem>>, vector<32x128xf32>,
    return
  }
  func.func @transform_0(%arg0: i32, %arg1: i32) -> (i32, i32) {
    %c0_i32 = arith.constant 0 : i32
    %c0_i32_0 = arith.constant 0 : i32
    return %arg0, %c0_i32 : i32, i32
  }
  func.func @transform_1(%arg0: i32, %arg1: i32) -> (i32, i32) {
    %c0_i32 = arith.constant 0 : i32
    %c0_i32_0 = arith.constant 0 : i32
    return %c0_i32, %arg1 : i32, i32
  }
  func.func @transform_2(%arg0: i32, %arg1: i32) -> (i32, i32) {
    %c0_i32 = arith.constant 0 : i32
    %c0_i32_0 = arith.constant 0 : i32
    return %c0_i32, %arg1 : i32, i32
  }
  func.func @transform_3(%arg0: i32, %arg1: i32) -> (i32, i32) {
    %c0_i32 = arith.constant 0 : i32
    %c0_i32_0 = arith.constant 0 : i32
    return %arg0, %c0_i32 : i32, i32
  }
  func.func @transform_4(%arg0: i32, %arg1: i32) -> (i32, i32) {
    %c0_i32 = arith.constant 0 : i32
    return %arg0, %arg1 : i32, i32
  }
}

module attributes {stable_mosaic.version = 11 : i64} {
  func.func @lse_kernel(%arg0: i32, %arg1: i32, %arg2: memref<32x128xbf16, #tpu.memory_space<vmem>>, %arg3: memref<128x128xbf16, #tpu.memory_space<vmem>>, %arg4: memref<1x128xf32, #tpu.memory_space<vmem>>, %arg5: memref<32x1xf32, #tpu.memory_space<vmem>>, %arg6: memref<32x1xf32, #tpu.memory_space<vmem>>, %arg7: memref<32x1xf32, #tpu.memory_space<vmem>>) attributes {dimension_semantics = [#tpu.dimension_semantics<parallel>, #tpu.dimension_semantics<arbitrary>], iteration_bounds = array<i64: 2, 2>, scalar_prefetch = 0 : i64, scratch_operands = 2 : i64, tpu.core_type = #tpu.core_type<tc>, window_params = [{transform_indices = @transform_0, window_bounds = array<i64: 32, 128>}, {transform_indices = @transform_1, window_bounds = array<i64: 128, 128>}, {transform_indices = @transform_2, window_bounds = array<i64: 1, 128>}, {transform_indices = @transform_3, window_bounds = array<i64: 32, 1>}]} {
    %c0_i32 = arith.constant 0 : i32
    %0 = arith.cmpi eq, %arg1, %c0_i32 : i32
    %1 = arith.extui %0 : i1 to i32
    %c0_i32_0 = arith.constant 0 : i32
    %2 = arith.cmpi ne, %1, %c0_i32_0 : i32
    scf.if %2 {
      %cst_17 = arith.constant 0xFF800000 : f32
      %28 = vector.broadcast %cst_17 : f32 to vector<32x1xf32>
      %c0_18 = arith.constant 0 : index
      %c0_19 = arith.constant 0 : index
      %29 = vector.load %arg6[%c0_18, %c0_19] : memref<32x1xf32, #tpu.memory_space<vmem>>, vector<32x1xf32>
      tpu.vector_store %arg6[%c0_18, %c0_19], %28 {strides = array<i32>} : memref<32x1xf32, #tpu.memory_space<vmem>>, vector<32x1xf32>,
      %cst_20 = arith.constant 0.000000e+00 : f32
      %30 = vector.broadcast %cst_20 : f32 to vector<32x1xf32>
      %c0_21 = arith.constant 0 : index
      %c0_22 = arith.constant 0 : index
      %31 = vector.load %arg7[%c0_21, %c0_22] : memref<32x1xf32, #tpu.memory_space<vmem>>, vector<32x1xf32>
      tpu.vector_store %arg7[%c0_21, %c0_22], %30 {strides = array<i32>} : memref<32x1xf32, #tpu.memory_space<vmem>>, vector<32x1xf32>,
    } else {
    }
    %c0 = arith.constant 0 : index
    %c0_1 = arith.constant 0 : index
    %3 = vector.load %arg2[%c0, %c0_1] : memref<32x128xbf16, #tpu.memory_space<vmem>>, vector<32x128xbf16>
    %c0_2 = arith.constant 0 : index
    %c0_3 = arith.constant 0 : index
    %4 = vector.load %arg3[%c0_2, %c0_3] : memref<128x128xbf16, #tpu.memory_space<vmem>>, vector<128x128xbf16>
    %cst = arith.constant dense<0.000000e+00> : vector<32x128xf32>
    %5 = tpu.matmul %3, %4, %cst {dimension_numbers = #tpu.dot_dimension_numbers<[1], [0], [0], [1], [0, 0, 1, 1], [], []>} : vector<32x128xbf16>, vector<128x128xbf16>, vector<32x128xf32> -> vector<32x128xf32>
    %c0_4 = arith.constant 0 : index
    %c0_5 = arith.constant 0 : index
    %6 = vector.load %arg4[%c0_4, %c0_5] : memref<1x128xf32, #tpu.memory_space<vmem>>, vector<1x128xf32>
    %7 = vector.broadcast %6 : vector<1x128xf32> to vector<32x128xf32>
    %8 = arith.addf %5, %7 : vector<32x128xf32>
    %c0_6 = arith.constant 0 : index
    %c0_7 = arith.constant 0 : index
    %9 = vector.load %arg6[%c0_6, %c0_7] : memref<32x1xf32, #tpu.memory_space<vmem>>, vector<32x1xf32>
    %cst_8 = arith.constant dense<0xFF800000> : vector<32xf32>
    %10 = vector.multi_reduction <maximumf>, %8, %cst_8 [1] : vector<32x128xf32> to vector<32xf32>
    %11 = vector.shape_cast %10 : vector<32xf32> to vector<32x1xf32>
    %12 = arith.maximumf %9, %11 : vector<32x1xf32>
    %c0_9 = arith.constant 0 : index
    %c0_10 = arith.constant 0 : index
    %13 = vector.load %arg7[%c0_9, %c0_10] : memref<32x1xf32, #tpu.memory_space<vmem>>, vector<32x1xf32>
    %14 = arith.subf %9, %12 : vector<32x1xf32>
    %15 = math.exp %14 : vector<32x1xf32>
    %16 = arith.mulf %13, %15 : vector<32x1xf32>
    %17 = vector.broadcast %12 : vector<32x1xf32> to vector<32x128xf32>
    %18 = arith.subf %8, %17 : vector<32x128xf32>
    %19 = math.exp %18 : vector<32x128xf32>
    %cst_11 = arith.constant dense<0.000000e+00> : vector<32xf32>
    %20 = vector.multi_reduction <add>, %19, %cst_11 [1] : vector<32x128xf32> to vector<32xf32>
    %21 = vector.shape_cast %20 : vector<32xf32> to vector<32x1xf32>
    %22 = arith.addf %16, %21 : vector<32x1xf32>
    %c0_12 = arith.constant 0 : index
    %c0_13 = arith.constant 0 : index
    %23 = vector.load %arg7[%c0_12, %c0_13] : memref<32x1xf32, #tpu.memory_space<vmem>>, vector<32x1xf32>
    tpu.vector_store %arg7[%c0_12, %c0_13], %22 {strides = array<i32>} : memref<32x1xf32, #tpu.memory_space<vmem>>, vector<32x1xf32>,
    %c0_14 = arith.constant 0 : index
    %c0_15 = arith.constant 0 : index
    %24 = vector.load %arg6[%c0_14, %c0_15] : memref<32x1xf32, #tpu.memory_space<vmem>>, vector<32x1xf32>
    tpu.vector_store %arg6[%c0_14, %c0_15], %12 {strides = array<i32>} : memref<32x1xf32, #tpu.memory_space<vmem>>, vector<32x1xf32>,
    %c1_i32 = arith.constant 1 : i32
    %25 = arith.cmpi eq, %arg1, %c1_i32 : i32
    %26 = arith.extui %25 : i1 to i32
    %c0_i32_16 = arith.constant 0 : i32
    %27 = arith.cmpi ne, %26, %c0_i32_16 : i32
    scf.if %27 {
      %c0_17 = arith.constant 0 : index
      %c0_18 = arith.constant 0 : index
      %28 = vector.load %arg6[%c0_17, %c0_18] : memref<32x1xf32, #tpu.memory_space<vmem>>, vector<32x1xf32>
      %c0_19 = arith.constant 0 : index
      %c0_20 = arith.constant 0 : index
      %29 = vector.load %arg7[%c0_19, %c0_20] : memref<32x1xf32, #tpu.memory_space<vmem>>, vector<32x1xf32>
      %30 = math.log %29 : vector<32x1xf32>
      %31 = arith.addf %28, %30 : vector<32x1xf32>
      %c0_21 = arith.constant 0 : index
      %c0_22 = arith.constant 0 : index
      %32 = vector.load %arg5[%c0_21, %c0_22] : memref<32x1xf32, #tpu.memory_space<vmem>>, vector<32x1xf32>
      tpu.vector_store %arg5[%c0_21, %c0_22], %31 {strides = array<i32>} : memref<32x1xf32, #tpu.memory_space<vmem>>, vector<32x1xf32>,
    } else {
    }
    return
  }
  func.func @transform_0(%arg0: i32, %arg1: i32) -> (i32, i32) {
    %c0_i32 = arith.constant 0 : i32
    %c0_i32_0 = arith.constant 0 : i32
    return %arg0, %c0_i32 : i32, i32
  }
  func.func @transform_1(%arg0: i32, %arg1: i32) -> (i32, i32) {
    %c0_i32 = arith.constant 0 : i32
    %c0_i32_0 = arith.constant 0 : i32
    return %c0_i32, %arg1 : i32, i32
  }
  func.func @transform_2(%arg0: i32, %arg1: i32) -> (i32, i32) {
    %c0_i32 = arith.constant 0 : i32
    %c0_i32_0 = arith.constant 0 : i32
    return %c0_i32, %arg1 : i32, i32
  }
  func.func @transform_3(%arg0: i32, %arg1: i32) -> (i32, i32) {
    %c0_i32 = arith.constant 0 : i32
    %c0_i32_0 = arith.constant 0 : i32
    return %arg0, %c0_i32 : i32, i32
  }
}

</mosaic_0001>

<bundles_post_ra>
// kernel: decoder_forward.5
= control target key start
LH: loop header
LB: loop body
LE: loop exit
PB: predicated region body
PF: predicated region fallthrough
CT: control target
= control target key end

     0   :  { %s938_s15 = smov 0   ;;  %s940_s16 = smov 0   ;;  %s1096_s0 = inlined_call_operand.vmem [shape: bf16[64,128], index: 0, kind: input, shape index: {}]   ;;  %s1097_s1 = inlined_call_operand.vmem [shape: bf16[128,256], index: 1, kind: input, shape index: {}]   ;;  %s1098_s2 = inlined_call_operand.vmem [shape: f32[1,256], index: 2, kind: input, shape index: {}]   ;;  %s1099_s3 = inlined_call_operand.vmem [shape: f32[64,1], index: 3, kind: input, shape index: {}]   ;;  %s1100_s4 = inlined_call_operand.vmem [shape: f32[64,256], index: 4, kind: output, shape index: {}]  }
   0x1   :  { %s942_s17 = smov 0   ;;  %s944_s18 = smov 0  }
   0x2   :  { %s946_s19 = smov 0   ;;  %s948_s20 = smov 0  }
   0x3   :  { %s950_s21 = smov 0   ;;  %s952_s22 = smov 0  }
   0x4   :  { %s954_s23 = smov 0  }
   0x5 LB: > { %s694_s24 = sadd.s32 4294967295, %s910_s23   ;;  %s23_s25 = sadd.s32 1, %s902_s21  ;;  %s910_s23 = sphi %s954_s23, %s14_s23   ;;  %s906_s22 = sphi %s952_s22, %s1109_s22   ;;  %s902_s21 = sphi %s950_s21, %s1108_s21   ;;  %s898_s20 = sphi %s948_s20, %s1107_s20   ;;  %s894_s19 = sphi %s946_s19, %s1106_s19   ;;  %s890_s18 = sphi %s944_s18, %s1105_s18   ;;  %s886_s17 = sphi %s942_s17, %s1104_s17   ;;  %s882_s16 = sphi %s940_s16, %s1103_s16   ;;  %s878_s15 = sphi %s938_s15, %s1102_s15  }
   0x6   : > { %p24_p0 = scmp.ge.s32.totalorder %s23_s25, 2  ;;  %s26_s26 = sadd.s32 1, %s906_s22 }
   0x7   : > { %s59_s27 = sadd.s32 1, %s890_s18  ;;  %p66_p1 = scmp.ne.s32.totalorder %s890_s18, %s886_s17 }
   0x8   : > { %s1111_s25 = smov (%p24_p0, %s23_s25), 0  ;;  %s1113_s26 = smov (!%p24_p0, %s26_s26), %s906_s22 }
   0x9   : > { %s56_s28 = ssub.s32 %s902_s21, %s1111_s25  ;;  %p67_p2 = scmp.eq.s32.totalorder %s910_s23, 0 }
   0xa   : > { %p28_p3 = scmp.ge.s32.totalorder %s1113_s26, 2  ;;  %p57_p4 = scmp.eq.s32.totalorder %s56_s28, 0 }
   0xb   : > { %p68_p5 = por %p67_p2, %p66_p1  ;;  %s139_s29 = sadd.s32 1, %s882_s16 }
   0xc   : > { %s1115_s26 = smov (%p28_p3, %s1113_s26), 0  ;;  %p149_p6 = scmp.ne.s32.totalorder %s882_s16, %s878_s15 }
   0xd   : > { %s999_s30 = scalar_select %p57_p4, %s890_s18, %s59_s27  }
   0xe   : > { %s134_s5 = ssub.s32 %s906_s22, %s1115_s26  ;;  %p150_p7 = scmp.eq.s32.totalorder %s694_s24, 3 }
   0xf   : > { %s136_s6 = sor.u32 %s134_s5, %s56_s28  ;;  %p697_p10 = scmp.ge.s32.totalorder %s910_s23, 4 }
  0x10   : > { %p137_p8 = scmp.eq.s32.totalorder %s136_s6, 0  ;;  %p1005_p9 = por %p150_p7, %p149_p6 }
  0x11   : > { %172 = sbr.rel (%p697_p10) target bundleno = 38 (0x26), region = 16 }
  0x12   : > { %s1010_s8 = scalar_select %p137_p8, %s882_s16, %s139_s29  }
  0x18   : > { %184 = sbr.rel (!%p68_p5) target bundleno = 38 (0x26), region = 24  ;;  %s186_s9 = sand.u32 (%p68_p5), 1, %s890_s18  }
  0x19   : > { %s699_s10 = sshll.u32 (%p68_p5), %s902_s21, 2  ;;  %s698_s11 = sshll.u32 (%p68_p5), %s186_s9, 6 }
  0x1a   : > { %s1018_s14 = scalar_lea.vmem (%p68_p5), %s1097_s1, %s699_s10  ;;  %s188_s24 = scalar_lea.vmem (%p68_p5), [#allocation2], %s698_s11 }
  0x1b   : > { %v206_v0 = vld [vmem:[%s1018_s14] sm:$0xf] (%p68_p5)  ;;  %v208_v1 = vld [vmem:[%s1018_s14 + $0x8] sm:$0xf] (%p68_p5)  ;;  %v210_v2 = vld [vmem:[%s1018_s14 + $0x10] sm:$0xf] (%p68_p5) }
  0x1c   : > { %207 = vst [vmem:[%s188_s24] sm:$0xf] (%p68_p5), %v206_v0  ;;  %209 = vst [vmem:[%s188_s24 + $0x4] sm:$0xf] (%p68_p5), %v208_v1  ;;  %v212_v3 = vld [vmem:[%s1018_s14 + $0x18] sm:$0xf] (%p68_p5) }
  0x1d   : > { %v214_v4 = vld [vmem:[%s1018_s14 + $0x20] sm:$0xf] (%p68_p5)  ;;  %211 = vst [vmem:[%s188_s24 + $0x8] sm:$0xf] (%p68_p5), %v210_v2  ;;  %213 = vst [vmem:[%s188_s24 + $0xc] sm:$0xf] (%p68_p5), %v212_v3 }
  0x1e   : > { %215 = vst [vmem:[%s188_s24 + $0x10] sm:$0xf] (%p68_p5), %v214_v4  ;;  %v216_v5 = vld [vmem:[%s1018_s14 + $0x28] sm:$0xf] (%p68_p5)  ;;  %v218_v6 = vld [vmem:[%s1018_s14 + $0x30] sm:$0xf] (%p68_p5) }
  0x1f   : > { %v220_v7 = vld [vmem:[%s1018_s14 + $0x38] sm:$0xf]  ;;  %217 = vst [vmem:[%s188_s24 + $0x14] sm:$0xf] %v216_v5  ;;  %219 = vst [vmem:[%s188_s24 + $0x18] sm:$0xf] %v218_v6 }
  0x20   : > { %221 = vst [vmem:[%s188_s24 + $0x1c] sm:$0xf] %v220_v7  ;;  %v222_v8 = vld [vmem:[%s1018_s14 + $0x40] sm:$0xf]  ;;  %v224_v9 = vld [vmem:[%s1018_s14 + $0x48] sm:$0xf] }
  0x21   : > { %v226_v10 = vld [vmem:[%s1018_s14 + $0x50] sm:$0xf]  ;;  %223 = vst [vmem:[%s188_s24 + $0x20] sm:$0xf] %v222_v8  ;;  %225 = vst [vmem:[%s188_s24 + $0x24] sm:$0xf] %v224_v9 }
  0x22   : > { %227 = vst [vmem:[%s188_s24 + $0x28] sm:$0xf] %v226_v10  ;;  %v228_v11 = vld [vmem:[%s1018_s14 + $0x58] sm:$0xf]  ;;  %v230_v12 = vld [vmem:[%s1018_s14 + $0x60] sm:$0xf] }
  0x23   : > { %v232_v13 = vld [vmem:[%s1018_s14 + $0x68] sm:$0xf]  ;;  %229 = vst [vmem:[%s188_s24 + $0x2c] sm:$0xf] %v228_v11  ;;  %231 = vst [vmem:[%s188_s24 + $0x30] sm:$0xf] %v230_v12 }
  0x24   : > { %233 = vst [vmem:[%s188_s24 + $0x34] sm:$0xf] %v232_v13  ;;  %v234_v14 = vld [vmem:[%s1018_s14 + $0x70] sm:$0xf]  ;;  %v236_v15 = vld [vmem:[%s1018_s14 + $0x78] sm:$0xf] }
  0x25   : > { %235 = vst [vmem:[%s188_s24 + $0x38] sm:$0xf] %v234_v14  ;;  %237 = vst [vmem:[%s188_s24 + $0x3c] sm:$0xf] %v236_v15 }
  0x26 PF: > { %p700_p11 = scmp.ge.s32.totalorder %s910_s23, 1  ;;  %p306_p12 = scmp.lt.s32.totalorder %s910_s23, 5 }
  0x28   : > { %p307_p13 = pnand %p700_p11, %p306_p12 }
  0x29   : > { %s313_s27 = sand.u32 (!%p307_p13), 1, %s886_s17   ;;  %s703_s28 = sshll.u32 (!%p307_p13), %s898_s20, 2  ;;  %v912_v16 = vmov (!%p307_p13), 0  }
  0x2a   : > { %310 = sbr.rel (%p307_p13) target bundleno = 305 (0x131), region = 73  ;;  %s701_s29 = sshll.u32 (!%p307_p13), %s313_s27, 6  ;;  %829 = vset.pattern.permute.xlu1 (!%p307_p13), %v912_v16  ;;  %828 = vset.pattern.permute.xlu0 (!%p307_p13), %v912_v16 }
  0x2b   : > { %p351_p0 = scmp.lt.s32.totalorder (!%p307_p13), %s703_s28, 7  ;;  %s1040_s5 = scalar_lea.vmem (!%p307_p13), [#allocation2], %s701_s29 }
  0x2c   : > { %v830_v17 = vld [vmem:[%s1040_s5] sm:$0xff] (!%p307_p13)   ;;  %v831_v18 = vld [vmem:[%s1040_s5 + $0x8] sm:$0xff] (!%p307_p13)   ;;  %v832_v19 = vld [vmem:[%s1040_s5 + $0x10] sm:$0xff] (!%p307_p13)   ;;  %p356_p1 = scmp.lt.s32.totalorder (!%p307_p13), %s894_s19, 1 }
  0x2d   : > { %735 = vmatprep.subr.bf16.mxu0 (!%p307_p13), %v830_v17  ;;  %v833_v20 = vld [vmem:[%s1040_s5 + $0x18] sm:$0xff] (!%p307_p13)   ;;  %v834_v24 = vld [vmem:[%s1040_s5 + $0x20] sm:$0xff] (!%p307_p13)   ;;  %v835_v27 = vld [vmem:[%s1040_s5 + $0x28] sm:$0xff] (!%p307_p13)  }
  0x2e   : > { %736 = vmatpush3.bf16.msra.mxu0 (!%p307_p13), %v830_v17  ;;  %v836_v28 = vld [vmem:[%s1040_s5 + $0x30] sm:$0xff] (!%p307_p13)   ;;  %v837_v29 = vld [vmem:[%s1040_s5 + $0x38] sm:$0xff] (!%p307_p13)  }
  0x2f   : > { %737 = vmatprep.subr.bf16.mxu0 (!%p307_p13), %v831_v18 }
  0x31   : > { %s1117_s28 = smov (!%p351_p0, %s703_s28), 7 }
  0x32   : > { %s704_s6 = sshll.u32 %s1117_s28, 2  ;;  %s706_s17 = sshll.u32 %s1117_s28, 3  ;;  %738 = vmatpush3.bf16.msra.mxu0 %v831_v18 }
  0x33   : > { %s354_s11 = scalar_lea.vmem %s1096_s0, %s704_s6  ;;  %s363_s14 = scalar_lea.vmem %s1099_s3, %s706_s17  ;;  %739 = vmatprep.subr.bf16.mxu0 %v832_v19 }
  0x34   : > { %v838_v21 = vld [vmem:[%s354_s11] sm:$0xff]   ;;  %v505_v22 = vld [vmem:[%s363_s14 + $0x10] sm:$0xff]  ;;  %v506_v25 = vld [vmem:[%s363_s14 + $0x18] sm:$0xff]  ;;  %s357_s24 = scalar_select %p356_p1, %s894_s19, 1 }
  0x35   : > { %751 = vmatprep.mubr.bf16.mxu0 %v838_v21  ;;  %v503_v23 = vld [vmem:[%s363_s14] sm:$0xff]  ;;  %519 = vperm.xlu1 %829, %v505_v22   ;;  %v504_v26 = vld [vmem:[%s363_s14 + $0x8] sm:$0xff]  ;;  %s347_s6 = sand.u32 1, %s878_s15   ;;  %s724_s15 = sshll.u32 (%p1005_p9), %s898_s20, 3 }
  0x36   : > { %740 = vmatpush3.bf16.msra.mxu0 %v832_v19  ;;  %509 = vperm.xlu0 %828, %v503_v23   ;;  %v839_v30 = vld [vmem:[%s354_s11 + $0x8] sm:$0xff]   ;;  %s358_s29 = scalar_lea.vmem %s1098_s2, %s357_s24  ;;  %s702_s17 = sshll.u32 %s347_s6, 5 }
  0x37   : > { %741 = vmatprep.subr.bf16.mxu0 %v833_v20  ;;  %v707_v32 = vld [vmem:[%s358_s29] ss:$0 sm:$0xff]  ;;  %s349_s5 = scalar_lea.vmem [#allocation3], %s702_s17  ;;  %s544_s9 = sadd.s32 (%p1005_p9), %s894_s19, %s724_s15 }
  0x38   : > { %s721_s10 = sshll.u32 (%p1005_p9), %s544_s9, 3 }
  0x39   : > { %524 = vperm.xlu1 %829, %v506_v25   ;;  %s546_s13 = scalar_lea.vmem (%p1005_p9), %s1100_s4, %s721_s10 }
  0x3a   : > { %742 = vmatpush3.bf16.msra.mxu0 %v833_v20  ;;  %514 = vperm.xlu0 %828, %v504_v26  }
  0x3b   : > { %743 = vmatprep.subr.bf16.mxu0 %v834_v24 }
  0x3e   : > { %744 = vmatpush3.bf16.msra.mxu0 %v834_v24 }
  0x3f   : > { %745 = vmatprep.subr.bf16.mxu0 %v835_v27 }
  0x42   : > { %746 = vmatpush3.bf16.msra.mxu0 %v835_v27 }
  0x43   : > { %747 = vmatprep.subr.bf16.mxu0 %v836_v28 }
  0x46   : > { %748 = vmatpush3.bf16.msra.mxu0 %v836_v28 }
  0x47   : > { %749 = vmatprep.subr.bf16.mxu0 %v837_v29 }
  0x4a   : > { %750 = vmatpush3.bf16.msra.mxu0 %v837_v29 }
  0x4d   : > { %752 = vmatmul.mubr.bf16.vlgmr.msra.gmra.mrb[0].mxu0 %v839_v30 }
  0xb4   : > { %v520_v31 = vpop.permute.xlu1 %519 }
  0xb5   : > { %v510_v33 = vpop.permute.xlu0 %509 }
  0xb8   : > { %v525_v42 = vpop.permute.xlu1 %524 }
  0xb9   : > { %v515_v45 = vpop.permute.xlu0 %514 }
 0x120   : > { %v753_v34 = vpop.f32.mrb[0].mxu0 }
 0x121   : > { %v497_v35 = vadd.f32 %v753_v34, %v707_v32  ;;  %v488_v36 = vpop.f32.mrb[1].mxu0 }
 0x122   : > { %v489_v37 = vadd.f32 %v707_v32, %v488_v36  ;;  %v754_v38 = vpop.f32.mrb[2].mxu0  ;;  %541 = sbr.rel (!%p1005_p9) target bundleno = 305 (0x131), region = 81 }
 0x123   : > { %v529_v39 = vsub.f32 %v497_v35, %v520_v31  ;;  %v500_v40 = vadd.f32 %v754_v38, %v707_v32  ;;  %v491_v41 = vpop.f32.mrb[3].mxu0 }
 0x124   : > { %v527_v43 = vsub.f32 %v489_v37, %v510_v33  ;;  %v492_v44 = vadd.f32 %v707_v32, %v491_v41 }
 0x125   : > { %533 = vst [vmem:[%s349_s5 + $0x10] sm:$0xff] %v529_v39  ;;  %v530_v46 = vsub.f32 %v500_v40, %v525_v42 }
 0x126   : > { %531 = vst [vmem:[%s349_s5] sm:$0xff] %v527_v43  ;;  %v528_v47 = vsub.f32 %v492_v44, %v515_v45 }
 0x127   : > { %534 = vst [vmem:[%s349_s5 + $0x18] sm:$0xff] %v530_v46 }
 0x128   : > { %532 = vst [vmem:[%s349_s5 + $0x8] sm:$0xff] %v528_v47 }
 0x12c   : > { %v584_v50 = vld [vmem:[%s349_s5 + $0x10] sm:$0xff] }
 0x12d   : > { %v580_v48 = vld [vmem:[%s349_s5] sm:$0xff]  ;;  %585 = vst [vmem:[%s546_s13 + $0x20] sm:$0xff] %v584_v50 }
 0x12e   : > { %v586_v51 = vld [vmem:[%s349_s5 + $0x18] sm:$0xff]  ;;  %581 = vst [vmem:[%s546_s13] sm:$0xff] %v580_v48 }
 0x12f   : > { %v582_v49 = vld [vmem:[%s349_s5 + $0x8] sm:$0xff]  ;;  %587 = vst [vmem:[%s546_s13 + $0x30] sm:$0xff] %v586_v51 }
 0x130   : > { %583 = vst [vmem:[%s546_s13 + $0x10] sm:$0xff] %v582_v49 }
 0x131 PF: > { %s14_s23 = sadd.s32 1, %s910_s23   ;;  %s1102_s15 = smov %s882_s16 }
 0x132   : > { %p11_p2 = scmp.ge.s32.totalorder %s14_s23, 6   ;;  %s1103_s16 = smov %s1010_s8 }
 0x133   : > { %s1104_s17 = smov %s890_s18  ;;  %s1105_s18 = smov %s999_s30 }
 0x134   : > { %s1106_s19 = smov %s902_s21  ;;  %s1107_s20 = smov %s906_s22 }
 0x135   : > { %s1108_s21 = smov %s1111_s25  ;;  %s1109_s22 = smov %s1115_s26 }
 0x136   :  { %13 = sbr.rel (!%p11_p2) target bundleno = 5 (0x5), region = 159 }

// kernel: decoder_forward.4
= control target key start
LH: loop header
LB: loop body
LE: loop exit
PB: predicated region body
PF: predicated region fallthrough
CT: control target
= control target key end

     0   :  { %s914_s12 = smov 0   ;;  %s916_s13 = smov 0   ;;  %s1067_s0 = inlined_call_operand.vmem [shape: bf16[64,128], index: 0, kind: input, shape index: {}]   ;;  %s1068_s1 = inlined_call_operand.vmem [shape: bf16[128,256], index: 1, kind: input, shape index: {}]   ;;  %s1069_s2 = inlined_call_operand.vmem [shape: f32[1,256], index: 2, kind: input, shape index: {}]   ;;  %s1070_s3 = inlined_call_operand.vmem [shape: f32[64,1], index: 3, kind: output, shape index: {}]  }
   0x1   :  { %s918_s14 = smov 0   ;;  %s920_s15 = smov 0  }
   0x2   :  { %s922_s16 = smov 0   ;;  %s924_s17 = smov 0  }
   0x3   :  { %s926_s18 = smov 0  }
   0x4 LB: > { %s22_s19 = sadd.s32 1, %s881_s16  ;;  %s25_s20 = sadd.s32 1, %s885_s17  ;;  %s889_s18 = sphi %s926_s18, %s13_s18   ;;  %s885_s17 = sphi %s924_s17, %s1076_s17   ;;  %s881_s16 = sphi %s922_s16, %s1075_s16   ;;  %s877_s15 = sphi %s920_s15, %s1074_s15   ;;  %s873_s14 = sphi %s918_s14, %s1073_s14   ;;  %s869_s13 = sphi %s916_s13, %s1072_s13   ;;  %s865_s12 = sphi %s914_s12, %s1071_s12  }
   0x5   : > { %p23_p0 = scmp.ge.s32.totalorder %s22_s19, 2  ;;  %s58_s21 = sadd.s32 1, %s869_s13 }
   0x6   : > { %p65_p1 = scmp.ne.s32.totalorder %s869_s13, %s865_s12  ;;  %p66_p2 = scmp.eq.s32.totalorder %s889_s18, 0 }
   0x7   : > { %s1078_s19 = smov (%p23_p0, %s22_s19), 0  ;;  %s1080_s20 = smov (!%p23_p0, %s25_s20), %s885_s17 }
   0x8   : > { %s55_s22 = ssub.s32 %s881_s16, %s1078_s19  ;;  %p67_p3 = por %p66_p2, %p65_p1 }
   0x9   : > { %p27_p4 = scmp.ge.s32.totalorder %s1080_s20, 2  ;;  %p56_p5 = scmp.eq.s32.totalorder %s55_s22, 0 }
   0xa   : > { %p686_p6 = scmp.ge.s32.totalorder %s889_s18, 4 }
   0xb   : > { %s1082_s20 = smov (%p27_p4, %s1080_s20), 0 }
   0xc   : > { %s963_s23 = scalar_select %p56_p5, %s869_s13, %s58_s21  }
   0xd   : > { %143 = sbr.rel (%p686_p6) target bundleno = 34 (0x22), region = 16 }
  0x14   : > { %155 = sbr.rel (!%p67_p3) target bundleno = 34 (0x22), region = 24  ;;  %s157_s24 = sand.u32 (%p67_p3), 1, %s869_s13  }
  0x15   : > { %s688_s25 = sshll.u32 (%p67_p3), %s881_s16, 2  ;;  %s687_s26 = sshll.u32 (%p67_p3), %s157_s24, 6 }
  0x16   : > { %s971_s29 = scalar_lea.vmem (%p67_p3), %s1068_s1, %s688_s25  ;;  %s159_s30 = scalar_lea.vmem (%p67_p3), [#allocation4], %s687_s26 }
  0x17   : > { %v177_v0 = vld [vmem:[%s971_s29] sm:$0xf] (%p67_p3)  ;;  %v179_v1 = vld [vmem:[%s971_s29 + $0x8] sm:$0xf] (%p67_p3)  ;;  %v181_v2 = vld [vmem:[%s971_s29 + $0x10] sm:$0xf] (%p67_p3) }
  0x18   : > { %178 = vst [vmem:[%s159_s30] sm:$0xf] (%p67_p3), %v177_v0  ;;  %180 = vst [vmem:[%s159_s30 + $0x4] sm:$0xf] (%p67_p3), %v179_v1  ;;  %v183_v3 = vld [vmem:[%s971_s29 + $0x18] sm:$0xf] (%p67_p3) }
  0x19   : > { %v185_v4 = vld [vmem:[%s971_s29 + $0x20] sm:$0xf] (%p67_p3)  ;;  %182 = vst [vmem:[%s159_s30 + $0x8] sm:$0xf] (%p67_p3), %v181_v2  ;;  %184 = vst [vmem:[%s159_s30 + $0xc] sm:$0xf] (%p67_p3), %v183_v3 }
  0x1a   : > { %186 = vst [vmem:[%s159_s30 + $0x10] sm:$0xf] (%p67_p3), %v185_v4  ;;  %v187_v5 = vld [vmem:[%s971_s29 + $0x28] sm:$0xf] (%p67_p3)  ;;  %v189_v6 = vld [vmem:[%s971_s29 + $0x30] sm:$0xf] (%p67_p3) }
  0x1b   : > { %v191_v7 = vld [vmem:[%s971_s29 + $0x38] sm:$0xf]  ;;  %188 = vst [vmem:[%s159_s30 + $0x14] sm:$0xf] %v187_v5  ;;  %190 = vst [vmem:[%s159_s30 + $0x18] sm:$0xf] %v189_v6 }
  0x1c   : > { %192 = vst [vmem:[%s159_s30 + $0x1c] sm:$0xf] %v191_v7  ;;  %v193_v8 = vld [vmem:[%s971_s29 + $0x40] sm:$0xf]  ;;  %v195_v9 = vld [vmem:[%s971_s29 + $0x48] sm:$0xf] }
  0x1d   : > { %v197_v10 = vld [vmem:[%s971_s29 + $0x50] sm:$0xf]  ;;  %194 = vst [vmem:[%s159_s30 + $0x20] sm:$0xf] %v193_v8  ;;  %196 = vst [vmem:[%s159_s30 + $0x24] sm:$0xf] %v195_v9 }
  0x1e   : > { %198 = vst [vmem:[%s159_s30 + $0x28] sm:$0xf] %v197_v10  ;;  %v199_v11 = vld [vmem:[%s971_s29 + $0x58] sm:$0xf]  ;;  %v201_v12 = vld [vmem:[%s971_s29 + $0x60] sm:$0xf] }
  0x1f   : > { %v203_v13 = vld [vmem:[%s971_s29 + $0x68] sm:$0xf]  ;;  %200 = vst [vmem:[%s159_s30 + $0x2c] sm:$0xf] %v199_v11  ;;  %202 = vst [vmem:[%s159_s30 + $0x30] sm:$0xf] %v201_v12 }
  0x20   : > { %204 = vst [vmem:[%s159_s30 + $0x34] sm:$0xf] %v203_v13  ;;  %v205_v14 = vld [vmem:[%s971_s29 + $0x70] sm:$0xf]  ;;  %v207_v15 = vld [vmem:[%s971_s29 + $0x78] sm:$0xf] }
  0x21   : > { %206 = vst [vmem:[%s159_s30 + $0x38] sm:$0xf] %v205_v14  ;;  %208 = vst [vmem:[%s159_s30 + $0x3c] sm:$0xf] %v207_v15 }
  0x22 PF: > { %p689_p7 = scmp.ge.s32.totalorder %s889_s18, 1  ;;  %p268_p8 = scmp.lt.s32.totalorder %s889_s18, 5 }
  0x24   : > { %p269_p9 = pnand %p689_p7, %p268_p8 }
  0x25   : > { %s275_s4 = sand.u32 (!%p269_p9), 1, %s865_s12   ;;  %s691_s5 = sshll.u32 (!%p269_p9), %s877_s15, 2 }
  0x26   : > { %272 = sbr.rel (%p269_p9) target bundleno = 763 (0x2fb), region = 69  ;;  %s690_s6 = sshll.u32 (!%p269_p9), %s275_s4, 6 }
  0x27   : > { %p307_p10 = scmp.lt.s32.totalorder (!%p269_p9), %s691_s5, 7  ;;  %p312_p11 = scmp.lt.s32.totalorder (!%p269_p9), %s873_s14, 1 }
  0x28   : > { %s1011_s27 = scalar_lea.vmem (!%p269_p9), [#allocation4], %s690_s6  ;;  %p695_p12 = scmp.ne.s32.totalorder (!%p269_p9), %s873_s14, 0 }
  0x2d   : > { %s1084_s5 = smov (!%p307_p10, %s691_s5), 7  ;;  %325 = sbr.rel (%p695_p12) target bundleno = 52 (0x34), region = 77 }
  0x2e   : > { %s995_s7 = scalar_select %p312_p11, %s873_s14, 1 }
  0x2f   : > { %s692_s8 = sshll.u32 %s1084_s5, 2  ;;  %s694_s9 = sshll.u32 %s1084_s5, 3  ;;  %vm326_vm0 = vcmask (!%p695_p12), 7168   ;;  %v891_v16 = vmov (!%p695_p12), -inf   ;;  %v892_v17 = vmov (!%p695_p12), 0.0  }
  0x30   : > { %s1000_s21 = scalar_lea.vmem %s1067_s0, %s692_s8  ;;  %s314_s25 = scalar_lea.vmem %s1069_s2, %s995_s7  ;;  %327 = vst.msk [vmem:[#allocation2] sm:$0xff] (!%p695_p12), %vm326_vm0, %v891_v16  ;;  %328 = vst.msk [vmem:[#allocation2 + $0x8] sm:$0xff] (!%p695_p12), %vm326_vm0, %v891_v16 }
  0x31   : > { %s1009_s26 = scalar_lea.vmem %s1070_s3, %s694_s9  ;;  %329 = vst.msk [vmem:[#allocation2 + $0x10] sm:$0xff] (!%p695_p12), %vm326_vm0, %v891_v16  ;;  %330 = vst.msk [vmem:[#allocation2 + $0x18] sm:$0xff] (!%p695_p12), %vm326_vm0, %v891_v16 }
  0x32   : > { %331 = vst.msk [vmem:[#allocation3] sm:$0xff] (!%p695_p12), %vm326_vm0, %v892_v17  ;;  %332 = vst.msk [vmem:[#allocation3 + $0x8] sm:$0xff] (!%p695_p12), %vm326_vm0, %v892_v17 }
  0x33   : > { %333 = vst.msk [vmem:[#allocation3 + $0x10] sm:$0xff] (!%p695_p12), %vm326_vm0, %v892_v17  ;;  %334 = vst.msk [vmem:[#allocation3 + $0x18] sm:$0xff] (!%p695_p12), %vm326_vm0, %v892_v17 }
  0x34 PF: > { %v801_v18 = vld [vmem:[%s1011_s27] sm:$0xff]   ;;  %v802_v19 = vld [vmem:[%s1011_s27 + $0x8] sm:$0xff]   ;;  %v803_v20 = vld [vmem:[%s1011_s27 + $0x10] sm:$0xff]   ;;  %v893_v37 = vmov 0   ;;  %vm551_vm1 = vcmask 7168   ;;  %p707_p13 = scmp.ne.s32.totalorder %s873_s14, 1 }
  0x35   : > { %720 = vmatprep.subr.bf16.mxu0 %v801_v18  ;;  %v804_v21 = vld [vmem:[%s1011_s27 + $0x18] sm:$0xff]   ;;  %v809_v22 = vld [vmem:[%s1000_s21] sm:$0xff]   ;;  %v806_v24 = vld [vmem:[%s1011_s27 + $0x28] sm:$0xff]   ;;  %800 = vset.pattern.permute.xlu1 %v893_v37 }
  0x36   : > { %721 = vmatpush3.bf16.msra.mxu0 %v801_v18  ;;  %736 = vmatprep.mubr.bf16.mxu0 %v809_v22  ;;  %v805_v23 = vld [vmem:[%s1011_s27 + $0x20] sm:$0xff]   ;;  %v807_v25 = vld [vmem:[%s1011_s27 + $0x30] sm:$0xff]   ;;  %v808_v26 = vld [vmem:[%s1011_s27 + $0x38] sm:$0xff]  }
  0x37   : > { %722 = vmatprep.subr.bf16.mxu0 %v802_v19  ;;  %v810_v27 = vld [vmem:[%s1000_s21 + $0x8] sm:$0xff]   ;;  %v696_v28 = vld [vmem:[%s314_s25] ss:$0 sm:$0xff]  ;;  %799 = vset.pattern.permute.xlu0 %v893_v37 }
  0x38   : > { %v473_v38 = vld [vmem:[#allocation2 + $0x10] sm:$0xff]  ;;  %v471_v39 = vld [vmem:[#allocation2] sm:$0xff]  ;;  %v474_v44 = vld [vmem:[#allocation2 + $0x18] sm:$0xff] }
  0x39   : > { %v472_v46 = vld [vmem:[#allocation2 + $0x8] sm:$0xff]  ;;  %v487_v11 = vld [vmem:[#allocation3] sm:$0xff] }
  0x3a   : > { %723 = vmatpush3.bf16.msra.mxu0 %v802_v19  ;;  %v489_v16 = vld [vmem:[#allocation3 + $0x10] sm:$0xff]  ;;  %v488_v17 = vld [vmem:[#allocation3 + $0x8] sm:$0xff] }
  0x3b   : > { %724 = vmatprep.subr.bf16.mxu0 %v803_v20 }
  0x3e   : > { %725 = vmatpush3.bf16.msra.mxu0 %v803_v20 }
  0x3f   : > { %726 = vmatprep.subr.bf16.mxu0 %v804_v21 }
  0x42   : > { %727 = vmatpush3.bf16.msra.mxu0 %v804_v21 }
  0x43   : > { %728 = vmatprep.subr.bf16.mxu0 %v805_v23 }
  0x46   : > { %729 = vmatpush3.bf16.msra.mxu0 %v805_v23 }
  0x47   : > { %730 = vmatprep.subr.bf16.mxu0 %v806_v24 }
  0x4a   : > { %731 = vmatpush3.bf16.msra.mxu0 %v806_v24  ;;  %v490_v24 = vld [vmem:[#allocation3 + $0x18] sm:$0xff] }
  0x4b   : > { %732 = vmatprep.subr.bf16.mxu0 %v807_v25 }
  0x4e   : > { %733 = vmatpush3.bf16.msra.mxu0 %v807_v25 }
  0x4f   : > { %734 = vmatprep.subr.bf16.mxu0 %v808_v26 }
  0x52   : > { %735 = vmatpush3.bf16.msra.mxu0 %v808_v26 }
  0x55   : > { %737 = vmatmul.mubr.bf16.vlgmr.msra.gmra.mrb[0].mxu0 %v810_v27 }
 0x128   : > { %v738_v29 = vpop.f32.mrb[0].mxu0 }
 0x129   : > { %v465_v30 = vadd.f32 %v738_v29, %v696_v28  ;;  %v456_v31 = vpop.f32.mrb[1].mxu0 }
 0x12a   : > { %v457_v32 = vadd.f32 %v696_v28, %v456_v31  ;;  %v739_v33 = vpop.f32.mrb[2].mxu0 }
 0x12b   : > { %479 = vmax.xlane.f32.xlu1 %v465_v30  ;;  %v459_v34 = vpop.f32.mrb[3].mxu0  ;;  %v468_v35 = vadd.f32 %v739_v33, %v696_v28 }
 0x12c   : > { %475 = vmax.xlane.f32.xlu0 %v457_v32  ;;  %v460_v36 = vadd.f32 %v696_v28, %v459_v34 }
 0x12f   : > { %481 = vmax.xlane.f32.xlu1 %v468_v35 }
 0x130   : > { %477 = vmax.xlane.f32.xlu0 %v460_v36 }
 0x1b8   : > { %v480_v40 = vpop.xlane.xlu1 %479 }
 0x1b9   : > { %v485_v41 = vmax.f32 %v473_v38, %v480_v40  ;;  %v476_v42 = vpop.xlane.xlu0 %475 }
 0x1ba   : > { %v483_v43 = vmax.f32 %v471_v39, %v476_v42 }
 0x1bb   : > { %v493_v45 = vsub.f32 %v473_v38, %v485_v41  ;;  %558 = vst.msk [vmem:[#allocation2 + $0x10] sm:$0xff] %vm551_vm1, %v485_v41  ;;  %519 = vperm.xlu1 %800, %v485_v41  }
 0x1bc   : > { %v491_v47 = vsub.f32 %v471_v39, %v483_v43  ;;  %556 = vst.msk [vmem:[#allocation2] sm:$0xff] %vm551_vm1, %v483_v43  ;;  %v482_v48 = vpop.xlane.xlu1 %481  ;;  %509 = vperm.xlu0 %799, %v483_v43  }
 0x1bd   : > { %v486_v49 = vmax.f32 %v474_v44, %v482_v48  ;;  %v478_v50 = vpop.xlane.xlu0 %477  ;;  %v499_v7 = vmul.f32 1.442695, %v493_v45 }
 0x1be   : > { %v484_v51 = vmax.f32 %v472_v46, %v478_v50  ;;  %v495_v6 = vmul.f32 1.442695, %v491_v47 }
 0x1bf   : > { %v494_v52 = vsub.f32 %v474_v44, %v486_v49  ;;  %559 = vst.msk [vmem:[#allocation2 + $0x18] sm:$0xff] %vm551_vm1, %v486_v49 }
 0x1c0   : > { %v492_v53 = vsub.f32 %v472_v46, %v484_v51  ;;  %557 = vst.msk [vmem:[#allocation2 + $0x8] sm:$0xff] %vm551_vm1, %v484_v51  ;;  %514 = vperm.xlu1 %800, %v484_v51  }
 0x1c1   : > { %v501_v9 = vmul.f32 1.442695, %v494_v52 }
 0x1c2   : > { %v497_v8 = vmul.f32 1.442695, %v492_v53  ;;  %v566_v41 = vld [vmem:[#allocation2 + $0x10] sm:$0xff] (!%p707_p13) }
 0x1c4   : > { %524 = vperm.xlu1 %800, %v486_v49  }
 0x1c6   : > { %v567_v45 = vld [vmem:[#allocation2 + $0x18] sm:$0xff] (!%p707_p13) }
 0x1c7   : > { %v565_v38 = vld [vmem:[#allocation2 + $0x8] sm:$0xff] (!%p707_p13) }
 0x23a   : > { %v520_v54 = vpop.permute.xlu1 %519 }
 0x23b   : > { %v529_v55 = vsub.f32 %v465_v30, %v520_v54  ;;  %v510_v56 = vpop.permute.xlu0 %509 }
 0x23c   : > { %v527_v57 = vsub.f32 %v457_v32, %v510_v56 }
 0x23d   : > { %v535_v59 = vmul.f32 1.442695, %v529_v55 }
 0x23e   : > { %v531_v58 = vmul.f32 1.442695, %v527_v57 }
 0x23f   : > { %v515_v60 = vpop.permute.xlu1 %514 }
 0x240   : > { %811 = vpow2.f32 %v531_v58  ;;  %v528_v61 = vsub.f32 %v460_v36, %v515_v60 }
 0x241   : > { %813 = vpow2.f32 %v535_v59 }
 0x242   : > { %v533_v62 = vmul.f32 1.442695, %v528_v61 }
 0x243   : > { %v525_v63 = vpop.permute.xlu1 %524 }
 0x244   : > { %815 = vpow2.f32 %v533_v62  ;;  %v530_v0 = vsub.f32 %v468_v35, %v525_v63  ;;  %v564_v35 = vld [vmem:[#allocation2] sm:$0xff] (!%p707_p13) }
 0x246   : > { %v537_v1 = vmul.f32 1.442695, %v530_v0 }
 0x248   : > { %817 = vpow2.f32 %v537_v1 }
 0x249   : > { %819 = vpow2.f32 %v495_v6 }
 0x24a   : > { %v812_v2 = vpop.eup %811  ;;  %821 = vpow2.f32 %v499_v7 }
 0x24b   : > { %539 = vadd.xlane.f32.xlu1 %v812_v2  ;;  %v814_v3 = vpop.eup %813  ;;  %823 = vpow2.f32 %v497_v8 }
 0x24c   : > { %825 = vpow2.f32 %v501_v9 }
 0x24e   : > { %v816_v4 = vpop.eup %815 }
 0x24f   : > { %541 = vadd.xlane.f32.xlu0 %v816_v4  ;;  %543 = vadd.xlane.f32.xlu1 %v814_v3 }
 0x252   : > { %v818_v5 = vpop.eup %817 }
 0x253   : > { %545 = vadd.xlane.f32.xlu1 %v818_v5  ;;  %v820_v10 = vpop.eup %819 }
 0x254   : > { %v822_v12 = vpop.eup %821  ;;  %v503_v13 = vmul.f32 %v820_v10, %v487_v11 }
 0x255   : > { %v824_v14 = vpop.eup %823  ;;  %v505_v19 = vmul.f32 %v822_v12, %v489_v16 }
 0x256   : > { %v504_v20 = vmul.f32 %v824_v14, %v488_v17  ;;  %v826_v21 = vpop.eup %825 }
 0x257   : > { %v506_v27 = vmul.f32 %v826_v21, %v490_v24 }
 0x2d8   : > { %v540_v15 = vpop.xlane.xlu1 %539 }
 0x2d9   : > { %v547_v18 = vadd.f32 %v540_v15, %v503_v13 }
 0x2db   : > { %552 = vst.msk [vmem:[#allocation3] sm:$0xff] %vm551_vm1, %v547_v18 }
 0x2dc   : > { %v544_v22 = vpop.xlane.xlu1 %543  ;;  %v542_v23 = vpop.xlane.xlu0 %541 }
 0x2dd   : > { %v549_v25 = vadd.f32 %v544_v22, %v505_v19  ;;  %v548_v26 = vadd.f32 %v542_v23, %v504_v20  ;;  %563 = sbr.rel (%p707_p13) target bundleno = 763 (0x2fb), region = 81 }
 0x2df   : > { %554 = vst.msk [vmem:[#allocation3 + $0x10] sm:$0xff] %vm551_vm1, %v549_v25  ;;  %553 = vst.msk [vmem:[#allocation3 + $0x8] sm:$0xff] %vm551_vm1, %v548_v26 }
 0x2e0   : > { %v546_v28 = vpop.xlane.xlu1 %545 }
 0x2e1   : > { %v550_v29 = vadd.f32 %v546_v28, %v506_v27 }
 0x2e2   : > { %v568_v30 = vld [vmem:[#allocation3] sm:$0xff] (!%p707_p13) }
 0x2e3   : > { %555 = vst.msk [vmem:[#allocation3 + $0x18] sm:$0xff] %vm551_vm1, %v550_v29  ;;  %827 = vlog2.f32 (!%p707_p13), %v568_v30 }
 0x2e6   : > { %v569_v31 = vld [vmem:[#allocation3 + $0x8] sm:$0xff]  ;;  %v570_v32 = vld [vmem:[#allocation3 + $0x10] sm:$0xff] }
 0x2e7   : > { %829 = vlog2.f32 %v569_v31 }
 0x2e8   : > { %831 = vlog2.f32 %v570_v32 }
 0x2ea   : > { %v571_v33 = vld [vmem:[#allocation3 + $0x18] sm:$0xff] }
 0x2eb   : > { %833 = vlog2.f32 %v571_v33 }
 0x2ed   : > { %v828_v34 = vpop.eup %827 }
 0x2ee   : > { %v573_v37 = vmul.f32 0.6931472, %v828_v34 }
 0x2f0   : > { %v580_v43 = vadd.f32 %v573_v37, %v564_v35 }
 0x2f1   : > { %v830_v36 = vpop.eup %829 }
 0x2f2   : > { %v832_v39 = vpop.eup %831  ;;  %v575_v40 = vmul.f32 0.6931472, %v830_v36  ;;  %584 = vst.msk [vmem:[%s1009_s26] sm:$0xff] %vm551_vm1, %v580_v43 }
 0x2f3   : > { %v577_v44 = vmul.f32 0.6931472, %v832_v39 }
 0x2f4   : > { %v581_v46 = vadd.f32 %v575_v40, %v565_v38 }
 0x2f5   : > { %v834_v42 = vpop.eup %833  ;;  %v582_v48 = vadd.f32 %v577_v44, %v566_v41 }
 0x2f6   : > { %v579_v47 = vmul.f32 0.6931472, %v834_v42  ;;  %585 = vst.msk [vmem:[%s1009_s26 + $0x8] sm:$0xff] %vm551_vm1, %v581_v46 }
 0x2f7   : > { %586 = vst.msk [vmem:[%s1009_s26 + $0x10] sm:$0xff] %vm551_vm1, %v582_v48 }
 0x2f8   : > { %v583_v49 = vadd.f32 %v579_v47, %v567_v45 }
 0x2fa   : > { %587 = vst.msk [vmem:[%s1009_s26 + $0x18] sm:$0xff] %vm551_vm1, %v583_v49 }
 0x2fb PF: > { %s13_s18 = sadd.s32 1, %s889_s18   ;;  %s1071_s12 = smov %s869_s13 }
 0x2fc   : > { %p10_p0 = scmp.ge.s32.totalorder %s13_s18, 6   ;;  %s1072_s13 = smov %s963_s23 }
 0x2fd   : > { %s1073_s14 = smov %s881_s16  ;;  %s1074_s15 = smov %s885_s17 }
 0x2fe   : > { %s1075_s16 = smov %s1078_s19  ;;  %s1076_s17 = smov %s1082_s20 }
 0x2ff   :  { %12 = sbr.rel (!%p10_p0) target bundleno = 4 (0x4), region = 122 }

// kernel: decoder_forward.3
= control target key start
LH: loop header
LB: loop body
LE: loop exit
PB: predicated region body
PF: predicated region fallthrough
CT: control target
= control target key end

     0   :  { %11 = vsyncpa [#allocation4], 0  ;;  %s1855_s18 = smov 0   ;;  %s2157_s0 = inlined_call_operand.vmem [shape: f32[64,384], index: 0, kind: input, shape index: {}]   ;;  %s2158_s1 = inlined_call_operand.vmem [shape: f32[8,128], index: 1, kind: input, shape index: {}]   ;;  %s2159_s2 = inlined_call_operand.hbm [shape: f32[128,384], index: 2, kind: input, shape index: {}]   ;;  %s2160_s3 = inlined_call_operand.vmem [shape: f32[1,128], index: 3, kind: input, shape index: {}]   ;;  %s2161_s4 = inlined_call_operand.vmem [shape: bf16[64,128], index: 4, kind: output, shape index: {0}]   ;;  %s2162_s5 = inlined_call_operand.vmem [shape: f32[8,128], index: 5, kind: output, shape index: {1}]  }
   0x1 LB: > { %s1861_s19 = sadd.s32 4294967295, %s1817_s18   ;;  %p1233_p0 = scmp.ge.s32.totalorder %s1817_s18, 1  ;;  %s1817_s18 = sphi %s1855_s18, %s17_s18  }
   0x2   : > { %p158_p1 = scmp.lt.s32.totalorder %s1817_s18, 3  ;;  %s1819_s20 = smov [#allocation3]  }
   0x3   : > { %s173_s21 = sshll.u32 %s1819_s20, 4  ;;  %p2163_p4 = scmp.eq.s32.totalorder %s1861_s19, 0  ;;  %s174_s21 = int_to_ptr.vmem [resolvable:$true] %s173_s21 }
   0x4   : > { %p1866_p3 = pnand %p1233_p0, %p158_p1  ;;  %s1779_s26 = scalar_lea.hbm %s2159_s2, 6144 }
   0x5   : > { %p1780_p7 = scmp.ne.s32.totalorder %s2159_s2, %s1779_s26  ;;  %p1786_p11 = scmp.lt.u32.totalorder %s1779_s26, %s2159_s2 }
   0x6   : > { %s2165_s22 = scalar_select %p1866_p3, 1, 0 }
   0x7   : > { %p1719_p5 = pneg %p1866_p3 }
   0x9   : > { %p1875_p6 = pnand %p2163_p4, %p1719_p5 }
   0xb   : > { %p1781_p8 = pneg %p1875_p6 }
   0xd   : > { %p1782_p9 = pnand %p1781_p8, %p1780_p7 }
   0xf   : > { %p1783_p10 = pneg %p1782_p9 }
  0x11   : > { %p1788_p12 = pnand %p1786_p11, %p1783_p10 }
  0x13   : > { %1791 = shalt.err (!%p1788_p12)
}
  0x14   : > { %s1792_s6 = scalar_lea.vmem %s174_s21, 6144  ;;  %p1800_p5 = scmp.lt.s32.totalorder %s174_s21, %s174_s21 }
  0x15   : > { %p1793_p13 = scmp.ne.s32.totalorder %s174_s21, %s1792_s6  ;;  %p1801_p2 = scmp.lt.s32.totalorder %s1792_s6, %s1792_s6 }
  0x17   : > { %p1795_p0 = pnand %p1793_p13, %p1781_p8  ;;  %p1802_p4 = por %p1801_p2, %p1800_p5 }
  0x19   : > { %p1796_p1 = pneg %p1795_p0 }
  0x1b   : > { %p1803_p3 = pnand %p1802_p4, %p1796_p1 }
  0x1d   : > { %1806 = shalt.err (!%p1803_p3)
}
  0x1e   : > { %s1820_s7 = smov 384   ;;  %s1821_s8 = smov 24  }
  0x1f   : > { %1722 = dma.hbm_to_vmem [thread:$0]  (!%p1875_p6), %s2159_s2, 6144, %s174_s21, [#allocation4], %s1820_s7, %s1820_s7, %s1821_s8  }
  0x20   : > { %p2167_p7 = scmp.ne.s32.totalorder %s2165_s22, 0 }
  0x21   : > { %p2168_p9 = scmp.eq.s32.totalorder (!%p2167_p7), %s1861_s19, 0 }
  0x22   : > { %202 = sbr.rel (%p2167_p7) target bundleno = 1133 (0x46d), region = 36 }
  0x29   : > { %1812 = dma.done.wait (%p2168_p9), [#allocation4], 6144   ;;  %p2169_p8 = pmov %p2168_p9 }
  0x2a   : > { %s1238_s11 = sshll.u32 %s1861_s19, 2  ;;  %p2170_p3 = scmp.ne.s32.totalorder %s1861_s19, 0 }
  0x2b   : > { %1814 = vsyncadd (%p2169_p8), [#allocation4], 4294961152  ;;  %p232_p2 = scmp.lt.s32.totalorder %s1238_s11, 7  ;;  %v248_v0 = vld [vmem:[%s2158_s1] sm:$0xff] (!%p2170_p3) }
  0x2c   : > { %247 = sbr.rel (%p2170_p3) target bundleno = 51 (0x33), region = 44  ;;  %249 = vst [vmem:[%s2162_s5] sm:$0xff] (!%p2170_p3), %v248_v0 }
  0x2d   : > { %s2172_s11 = smov (!%p232_p2, %s1238_s11), 7 }
  0x2e   : > { %s1714_s12 = smul.u32 24, %s2172_s11  ;;  %s1241_s13 = sshll.u32 %s2172_s11, 2 }
  0x2f   : > { %s1905_s16 = scalar_lea.vmem %s2161_s4, %s1241_s13 }
  0x30   : > { %s1910_s21 = scalar_lea.vmem %s2157_s0, %s1714_s12 }
  0x33 PF: > { %v265_v1 = vld [vmem:[#allocation3 + $0x8] sm:$0xff]  ;;  %v268_v2 = vld [vmem:[#allocation3 + $0x20] sm:$0xff]  ;;  %v267_v5 = vld [vmem:[#allocation3 + $0x18] sm:$0xff]  ;;  %v1822_v8 = vmov 0.0|0.0   ;;  %v1823_v9 = vmov 0.0   ;;  %vm1824_vm0 = vmmov 0  }
  0x34   : > { %v264_v3 = vld [vmem:[#allocation3] sm:$0xff]  ;;  %v1920_v4 = vpack.c.bf16 %v268_v2, %v265_v1  ;;  %v271_v6 = vld [vmem:[#allocation3 + $0x38] sm:$0xff]  ;;  %v274_v7 = vld [vmem:[#allocation3 + $0x50] sm:$0xff]  ;;  %1522 = vmatprep.subr.bf16.mxu1 %v1822_v8  ;;  %376 = vmatprep.mubr.f32.mxu0 %v1823_v9 }
  0x35   : > { %v1924_v10 = vpack.c.bf16 %v267_v5, %v264_v3  ;;  %v1926_v11 = vpack.c.bf16 %v274_v7, %v271_v6  ;;  %v270_v12 = vld [vmem:[#allocation3 + $0x30] sm:$0xff]  ;;  %v273_v13 = vld [vmem:[#allocation3 + $0x48] sm:$0xff]  ;;  %1382 = vmatprep.mubr.msk.f32.mxu1 %vm1824_vm0, %v1823_v9  ;;  %v280_v15 = vld [vmem:[#allocation3 + $0x80] sm:$0xff] }
  0x36   : > { %v277_v14 = vld [vmem:[#allocation3 + $0x68] sm:$0xff]  ;;  %1491 = vmatprep.subr.bf16.mxu0 %v1920_v4  ;;  %v1932_v16 = vpack.c.bf16 %v273_v13, %v270_v12  ;;  %v276_v18 = vld [vmem:[#allocation3 + $0x60] sm:$0xff]  ;;  %v279_v19 = vld [vmem:[#allocation3 + $0x78] sm:$0xff] }
  0x37   : > { %1493 = vmatpush1.bf16.msra.mxu0 %v1924_v10  ;;  %v1935_v17 = vpack.c.bf16 %v280_v15, %v277_v14  ;;  %v283_v20 = vld [vmem:[#allocation3 + $0x98] sm:$0xff]  ;;  %v286_v21 = vld [vmem:[#allocation3 + $0xb0] sm:$0xff]  ;;  %v1938_v22 = vpack.c.bf16 %v279_v19, %v276_v18  ;;  %v285_v25 = vld [vmem:[#allocation3 + $0xa8] sm:$0xff] }
  0x38   : > { %1495 = vmatprep.subr.bf16.mxu0 %v1926_v11  ;;  %v282_v23 = vld [vmem:[#allocation3 + $0x90] sm:$0xff]  ;;  %v1941_v24 = vpack.c.bf16 %v286_v21, %v283_v20  ;;  %v269_v27 = vld [vmem:[#allocation3 + $0x28] sm:$0xff]  ;;  %v292_v29 = vld [vmem:[#allocation3 + $0xe0] sm:$0xff] }
  0x39   : > { %v266_v26 = vld [vmem:[#allocation3 + $0x10] sm:$0xff]  ;;  %v289_v28 = vld [vmem:[#allocation3 + $0xc8] sm:$0xff]  ;;  %v272_v31 = vld [vmem:[#allocation3 + $0x40] sm:$0xff]  ;;  %v1946_v33 = vpack.c.bf16 %v285_v25, %v282_v23 }
  0x3a   : > { %v1943_v30 = vpack.c.bf16 %v269_v27, %v266_v26  ;;  %v275_v32 = vld [vmem:[#allocation3 + $0x58] sm:$0xff]  ;;  %v288_v34 = vld [vmem:[#allocation3 + $0xc0] sm:$0xff]  ;;  %v1952_v36 = vpack.c.bf16 %v292_v29, %v289_v28  ;;  %v278_v38 = vld [vmem:[#allocation3 + $0x70] sm:$0xff] }
  0x3b   : > { %1497 = vmatpush1.bf16.msra.mxu0 %v1932_v16  ;;  %v1949_v35 = vpack.c.bf16 %v275_v32, %v272_v31  ;;  %v291_v37 = vld [vmem:[#allocation3 + $0xd8] sm:$0xff]  ;;  %v281_v39 = vld [vmem:[#allocation3 + $0x88] sm:$0xff]  ;;  %v298_v41 = vld [vmem:[#allocation3 + $0x110] sm:$0xff] }
  0x3c   : > { %1499 = vmatprep.subr.bf16.mxu0 %v1935_v17  ;;  %1524 = vmatpush3.bf16.msra.mxu1 %v1943_v30  ;;  %v295_v40 = vld [vmem:[#allocation3 + $0xf8] sm:$0xff]  ;;  %v1956_v42 = vpack.c.bf16 %v291_v37, %v288_v34  ;;  %v294_v43 = vld [vmem:[#allocation3 + $0xf0] sm:$0xff]  ;;  %v1959_v44 = vpack.c.bf16 %v281_v39, %v278_v38  ;;  %v297_v46 = vld [vmem:[#allocation3 + $0x108] sm:$0xff] }
  0x3d   : > { %1525 = vmatprep.subr.bf16.mxu1 %v1822_v8  ;;  %v1962_v45 = vpack.c.bf16 %v298_v41, %v295_v40  ;;  %v284_v47 = vld [vmem:[#allocation3 + $0xa0] sm:$0xff]  ;;  %v287_v48 = vld [vmem:[#allocation3 + $0xb8] sm:$0xff]  ;;  %v301_v49 = vld [vmem:[#allocation3 + $0x128] sm:$0xff]  ;;  %v1966_v51 = vpack.c.bf16 %v297_v46, %v294_v43 }
  0x3e   : > { %v304_v50 = vld [vmem:[#allocation3 + $0x140] sm:$0xff]  ;;  %v1969_v53 = vpack.c.bf16 %v287_v48, %v284_v47  ;;  %v303_v55 = vld [vmem:[#allocation3 + $0x138] sm:$0xff]  ;;  %v290_v56 = vld [vmem:[#allocation3 + $0xd0] sm:$0xff] }
  0x3f   : > { %1501 = vmatpush1.bf16.msra.mxu0 %v1938_v22  ;;  %v300_v52 = vld [vmem:[#allocation3 + $0x120] sm:$0xff]  ;;  %v1972_v54 = vpack.c.bf16 %v304_v50, %v301_v49  ;;  %v293_v57 = vld [vmem:[#allocation3 + $0xe8] sm:$0xff]  ;;  %v307_v58 = vld [vmem:[#allocation3 + $0x158] sm:$0xff] }
  0x40   : > { %1503 = vmatprep.subr.bf16.mxu0 %v1941_v24  ;;  %1527 = vmatpush3.bf16.msra.mxu1 %v1949_v35  ;;  %v310_v59 = vld [vmem:[#allocation3 + $0x170] sm:$0xff]  ;;  %v1976_v60 = vpack.c.bf16 %v303_v55, %v300_v52  ;;  %v1979_v62 = vpack.c.bf16 %v293_v57, %v290_v56  ;;  %v309_v0 = vld [vmem:[#allocation3 + $0x168] sm:$0xff]  ;;  %v296_v1 = vld [vmem:[#allocation3 + $0x100] sm:$0xff] }
  0x41   : > { %1528 = vmatprep.subr.bf16.mxu1 %v1822_v8  ;;  %v306_v61 = vld [vmem:[#allocation3 + $0x150] sm:$0xff]  ;;  %v1982_v63 = vpack.c.bf16 %v310_v59, %v307_v58  ;;  %v299_v2 = vld [vmem:[#allocation3 + $0x118] sm:$0xff]  ;;  %v305_v7 = vld [vmem:[#allocation3 + $0x148] sm:$0xff] }
  0x42   : > { %v1986_v3 = vpack.c.bf16 %v309_v0, %v306_v61  ;;  %v1989_v5 = vpack.c.bf16 %v299_v2, %v296_v1  ;;  %v302_v6 = vld [vmem:[#allocation3 + $0x130] sm:$0xff]  ;;  %v1997_v12 = vld [vmem:[%s2162_s5] sm:$0xff]  ;;  %v311_v15 = vld [vmem:[#allocation3 + $0x178] sm:$0xff] }
  0x43   : > { %1505 = vmatpush1.bf16.msra.mxu0 %v1946_v33  ;;  %v2000_v13 = vpack.c.bf16 %v305_v7, %v302_v6  ;;  %v308_v14 = vld [vmem:[#allocation3 + $0x160] sm:$0xff]  ;;  %v262_v26 = vld [vmem:[%s1910_s21 + $0x8] sm:$0xff]  ;;  %v263_v41 = vld [vmem:[%s1910_s21 + $0x10] sm:$0xff] }
  0x44   : > { %1507 = vmatprep.subr.bf16.mxu0 %v1952_v36  ;;  %1530 = vmatpush3.bf16.msra.mxu1 %v1959_v44  ;;  %v2006_v18 = vpack.c.bf16 %v311_v15, %v308_v14  ;;  %v261_v19 = vld [vmem:[%s1910_s21] sm:$0xff]  ;;  %v1246_v56 = vld [vmem:[%s1910_s21 + $0x18] sm:$0xff] }
  0x45   : > { %1531 = vmatprep.subr.bf16.mxu1 %v1822_v8  ;;  %v2052_v37 = vld [vmem:[%s2160_s3] ss:$0 sm:$0xff] }
  0x46   : > { %v1247_v2 = vld [vmem:[%s1910_s21 + $0x20] sm:$0xff] }
  0x47   : > { %1509 = vmatpush1.bf16.msra.mxu0 %v1956_v42 }
  0x48   : > { %1511 = vmatprep.subr.bf16.mxu0 %v1962_v45  ;;  %1533 = vmatpush3.bf16.msra.mxu1 %v1969_v53 }
  0x49   : > { %1534 = vmatprep.subr.bf16.mxu1 %v1822_v8 }
  0x4b   : > { %1513 = vmatpush1.bf16.msra.mxu0 %v1966_v51 }
  0x4c   : > { %1515 = vmatprep.subr.bf16.mxu0 %v1972_v54  ;;  %1536 = vmatpush3.bf16.msra.mxu1 %v1979_v62 }
  0x4d   : > { %1537 = vmatprep.subr.bf16.mxu1 %v1822_v8 }
  0x4f   : > { %1517 = vmatpush1.bf16.msra.mxu0 %v1976_v60 }
  0x50   : > { %1519 = vmatprep.subr.bf16.mxu0 %v1982_v63  ;;  %1539 = vmatpush3.bf16.msra.mxu1 %v1989_v5 }
  0x51   : > { %1540 = vmatprep.subr.bf16.mxu1 %v1822_v8 }
  0x53   : > { %1521 = vmatpush1.bf16.msra.mxu0 %v1986_v3 }
  0x54   : > { %1547 = vmatprep.subr.bf16.mxu0 %v1920_v4  ;;  %1542 = vmatpush3.bf16.msra.mxu1 %v2000_v13 }
  0x55   : > { %1543 = vmatprep.subr.bf16.mxu1 %v1822_v8 }
  0x56   : > { %377 = vmatmul.mubr.f32.vlgmr.msra.gmra.mrb[0].mxu0 %v1997_v12 }
  0x57   : > { %1549 = vmatpush1.bf16.msra.mxu0 %v1924_v10  ;;  %593 = vmatprep.mubr.f32.mxu0 %v1823_v9 }
  0x58   : > { %1551 = vmatprep.subr.bf16.mxu0 %v1926_v11  ;;  %1545 = vmatpush3.bf16.msra.mxu1 %v2006_v18 }
  0x59   : > { %1578 = vmatprep.subr.bf16.mxu1 %v1822_v8 }
  0x5b   : > { %1553 = vmatpush1.bf16.msra.mxu0 %v1932_v16  ;;  %1383 = vmatmul.mubr.f32.vlgmr.msra.gmra.mrb[0].mxu1 %v1997_v12 }
  0x5c   : > { %1555 = vmatprep.subr.bf16.mxu0 %v1935_v17  ;;  %1580 = vmatpush3.bf16.msra.mxu1 %v1943_v30 }
  0x5d   : > { %1581 = vmatprep.subr.bf16.mxu1 %v1822_v8  ;;  %1417 = vmatprep.mubr.msk.f32.mxu1 %vm1824_vm0, %v1823_v9 }
  0x5f   : > { %1557 = vmatpush1.bf16.msra.mxu0 %v1938_v22 }
  0x60   : > { %1559 = vmatprep.subr.bf16.mxu0 %v1941_v24  ;;  %1583 = vmatpush3.bf16.msra.mxu1 %v1949_v35 }
  0x61   : > { %1584 = vmatprep.subr.bf16.mxu1 %v1822_v8 }
  0x63   : > { %1561 = vmatpush1.bf16.msra.mxu0 %v1946_v33 }
  0x64   : > { %1563 = vmatprep.subr.bf16.mxu0 %v1952_v36  ;;  %1586 = vmatpush3.bf16.msra.mxu1 %v1959_v44 }
  0x65   : > { %1587 = vmatprep.subr.bf16.mxu1 %v1822_v8 }
  0x67   : > { %1565 = vmatpush1.bf16.msra.mxu0 %v1956_v42 }
  0x68   : > { %1567 = vmatprep.subr.bf16.mxu0 %v1962_v45  ;;  %1589 = vmatpush3.bf16.msra.mxu1 %v1969_v53 }
  0x69   : > { %1590 = vmatprep.subr.bf16.mxu1 %v1822_v8 }
  0x6b   : > { %1569 = vmatpush1.bf16.msra.mxu0 %v1966_v51 }
  0x6c   : > { %1571 = vmatprep.subr.bf16.mxu0 %v1972_v54  ;;  %1592 = vmatpush3.bf16.msra.mxu1 %v1979_v62 }
  0x6d   : > { %1593 = vmatprep.subr.bf16.mxu1 %v1822_v8 }
  0x6f   : > { %1573 = vmatpush1.bf16.msra.mxu0 %v1976_v60 }
  0x70   : > { %1575 = vmatprep.subr.bf16.mxu0 %v1982_v63  ;;  %1595 = vmatpush3.bf16.msra.mxu1 %v1989_v5 }
  0x71   : > { %1596 = vmatprep.subr.bf16.mxu1 %v1822_v8 }
  0x73   : > { %1577 = vmatpush1.bf16.msra.mxu0 %v1986_v3 }
  0x74   : > { %1603 = vmatprep.subr.bf16.mxu0 %v1920_v4  ;;  %1598 = vmatpush3.bf16.msra.mxu1 %v2000_v13 }
  0x75   : > { %1599 = vmatprep.subr.bf16.mxu1 %v1822_v8 }
  0x78   : > { %1601 = vmatpush3.bf16.msra.mxu1 %v2006_v18 }
  0x79   : > { %1634 = vmatprep.subr.bf16.mxu1 %v1822_v8 }
 0x129   : > { %v378_v20 = vpop.f32.mrb[0].mxu0 }
 0x12a   : > { %v453_v21 = vadd.f32 %v378_v20, %v261_v19  ;;  %v380_v23 = vpop.f32.mrb[1].mxu0  ;;  %v1248_v20 = vld [vmem:[%s1910_s21 + $0x28] sm:$0xff] }
 0x12b   : > { %v460_v28 = vadd.f32 %v380_v23, %v262_v26 }
 0x12c   : > { %v1244_v25 = vmul.f32 -1.442695, %v453_v21 }
 0x12d   : > { %v1245_v31 = vmul.f32 -1.442695, %v460_v28 }
 0x12e   : > { %1739 = vpow2.f32 %v1244_v25  ;;  %v449_v27 = vpop.f32.mrb[0].mxu1 }
 0x12f   : > { %v1384_v29 = vpop.f32.mrb[1].mxu1  ;;  %1741 = vpow2.f32 %v1245_v31  ;;  %v467_v38 = vadd.f32 %v2052_v37, %v449_v27 }
 0x138   : > { %v1740_v32 = vpop.eup %1739 }
 0x139   : > { %v457_v34 = vadd.f32 1.0, %v1740_v32  ;;  %v1742_v39 = vpop.eup %1741 }
 0x13a   : > { %v464_v46 = vadd.f32 1.0, %v1742_v39 }
 0x13b   : > { %1743 = vrcp.f32 %v457_v34 }
 0x145   : > { %v1744_v40 = vpop.eup %1743 }
 0x146   : > { %v468_v43 = vmul.f32 %v1744_v40, %v467_v38 }
 0x148   : > { %v469_v47 = vadd.f32 %v468_v43, %v263_v41 }
 0x14a   : > { %1745 = vtanh.f32 %v469_v47 }
 0x14b   : > { %1747 = vrcp.f32 %v464_v46  ;;  %v1257_v46 = vld [vmem:[%s1910_s21 + $0x50] sm:$0xff] }
 0x154   : > { %v1746_v48 = vpop.eup %1745 }
 0x155   : > { %v471_v49 = vsub.f32 %v1997_v12, %v1746_v48  ;;  %v1748_v50 = vpop.eup %1747 }
 0x157   : > { %v472_v52 = vmul.f32 %v1748_v50, %v471_v49 }
 0x159   : > { %v2057_v55 = vadd.f32 %v1746_v48, %v472_v52 }
 0x15b   : > { %594 = vmatmul.mubr.f32.vlgmr.msra.gmra.mrb[2].mxu0 %v2057_v55  ;;  %1418 = vmatmul.mubr.f32.vlgmr.msra.gmra.mrb[2].mxu1 %v2057_v55 }
 0x15c   : > { %1605 = vmatpush1.bf16.msra.mxu0 %v1924_v10  ;;  %1636 = vmatpush3.bf16.msra.mxu1 %v1943_v30 }
 0x15d   : > { %1607 = vmatprep.subr.bf16.mxu0 %v1926_v11  ;;  %1637 = vmatprep.subr.bf16.mxu1 %v1822_v8 }
 0x15e   : > { %811 = vmatprep.mubr.f32.mxu0 %v1823_v9  ;;  %1452 = vmatprep.mubr.msk.f32.mxu1 %vm1824_vm0, %v1823_v9 }
 0x160   : > { %1609 = vmatpush1.bf16.msra.mxu0 %v1932_v16  ;;  %1639 = vmatpush3.bf16.msra.mxu1 %v1949_v35 }
 0x161   : > { %1611 = vmatprep.subr.bf16.mxu0 %v1935_v17  ;;  %1640 = vmatprep.subr.bf16.mxu1 %v1822_v8 }
 0x164   : > { %1613 = vmatpush1.bf16.msra.mxu0 %v1938_v22  ;;  %1642 = vmatpush3.bf16.msra.mxu1 %v1959_v44 }
 0x165   : > { %1615 = vmatprep.subr.bf16.mxu0 %v1941_v24  ;;  %1643 = vmatprep.subr.bf16.mxu1 %v1822_v8 }
 0x168   : > { %1617 = vmatpush1.bf16.msra.mxu0 %v1946_v33  ;;  %1645 = vmatpush3.bf16.msra.mxu1 %v1969_v53 }
 0x169   : > { %1619 = vmatprep.subr.bf16.mxu0 %v1952_v36  ;;  %1646 = vmatprep.subr.bf16.mxu1 %v1822_v8 }
 0x16c   : > { %1621 = vmatpush1.bf16.msra.mxu0 %v1956_v42  ;;  %1648 = vmatpush3.bf16.msra.mxu1 %v1979_v62 }
 0x16d   : > { %1623 = vmatprep.subr.bf16.mxu0 %v1962_v45  ;;  %1649 = vmatprep.subr.bf16.mxu1 %v1822_v8 }
 0x170   : > { %1625 = vmatpush1.bf16.msra.mxu0 %v1966_v51  ;;  %1651 = vmatpush3.bf16.msra.mxu1 %v1989_v5 }
 0x171   : > { %1627 = vmatprep.subr.bf16.mxu0 %v1972_v54  ;;  %1652 = vmatprep.subr.bf16.mxu1 %v1822_v8 }
 0x174   : > { %1629 = vmatpush1.bf16.msra.mxu0 %v1976_v60  ;;  %1654 = vmatpush3.bf16.msra.mxu1 %v2000_v13 }
 0x175   : > { %1631 = vmatprep.subr.bf16.mxu0 %v1982_v63  ;;  %1655 = vmatprep.subr.bf16.mxu1 %v1822_v8 }
 0x178   : > { %1633 = vmatpush1.bf16.msra.mxu0 %v1986_v3  ;;  %1657 = vmatpush3.bf16.msra.mxu1 %v2006_v18 }
 0x179   : > { %1659 = vmatprep.subr.bf16.mxu0 %v1920_v4  ;;  %1690 = vmatprep.subr.bf16.mxu1 %v1822_v8 }
 0x22e   : > { %v595_v57 = vpop.f32.mrb[2].mxu0  ;;  %v666_v58 = vpop.f32.mrb[2].mxu1 }
 0x22f   : > { %v670_v59 = vadd.f32 %v1246_v56, %v595_v57  ;;  %v597_v61 = vpop.f32.mrb[3].mxu0  ;;  %v1419_v0 = vpop.f32.mrb[3].mxu1  ;;  %v684_v4 = vadd.f32 %v2052_v37, %v666_v58  ;;  %v1258_v57 = vld [vmem:[%s1910_s21 + $0x58] sm:$0xff] }
 0x230   : > { %v677_v6 = vadd.f32 %v1247_v2, %v597_v61 }
 0x231   : > { %v1249_v1 = vmul.f32 -1.442695, %v670_v59 }
 0x232   : > { %v1250_v7 = vmul.f32 -1.442695, %v677_v6 }
 0x233   : > { %1749 = vpow2.f32 %v1249_v1 }
 0x234   : > { %1751 = vpow2.f32 %v1250_v7 }
 0x23d   : > { %v1750_v12 = vpop.eup %1749 }
 0x23e   : > { %v674_v14 = vadd.f32 1.0, %v1750_v12  ;;  %v1752_v15 = vpop.eup %1751 }
 0x23f   : > { %v681_v25 = vadd.f32 1.0, %v1752_v15 }
 0x240   : > { %1753 = vrcp.f32 %v674_v14 }
 0x24a   : > { %v1754_v19 = vpop.eup %1753 }
 0x24b   : > { %v685_v21 = vmul.f32 %v1754_v19, %v684_v4 }
 0x24d   : > { %v686_v23 = vadd.f32 %v1248_v20, %v685_v21 }
 0x24f   : > { %1755 = vtanh.f32 %v686_v23 }
 0x250   : > { %1757 = vrcp.f32 %v681_v25 }
 0x259   : > { %v1756_v26 = vpop.eup %1755 }
 0x25a   : > { %v688_v27 = vsub.f32 %v2057_v55, %v1756_v26  ;;  %v1758_v28 = vpop.eup %1757 }
 0x25c   : > { %v689_v29 = vmul.f32 %v1758_v28, %v688_v27 }
 0x25e   : > { %v2101_v31 = vadd.f32 %v1756_v26, %v689_v29 }
 0x260   : > { %812 = vmatmul.mubr.f32.vlgmr.msra.gmra.mrb[4].mxu0 %v2101_v31  ;;  %v1274_v32 = vpack.c.bf16 %v2101_v31, %v2057_v55  ;;  %1453 = vmatmul.mubr.f32.vlgmr.msra.gmra.mrb[4].mxu1 %v2101_v31 }
 0x261   : > { %1661 = vmatpush1.bf16.msra.mxu0 %v1924_v10  ;;  %1692 = vmatpush3.bf16.msra.mxu1 %v1943_v30  ;;  %v1252_v30 = vld [vmem:[%s1910_s21 + $0x38] sm:$0xff] }
 0x262   : > { %1275 = vst [vmem:[%s1905_s16] sm:$0xff] %v1274_v32   ;;  %1663 = vmatprep.subr.bf16.mxu0 %v1926_v11  ;;  %1693 = vmatprep.subr.bf16.mxu1 %v1822_v8 }
 0x263   : > { %1029 = vmatprep.mubr.f32.mxu0 %v1823_v9  ;;  %1487 = vmatprep.mubr.msk.f32.mxu1 %vm1824_vm0, %v1823_v9  ;;  %v1251_v9 = vld [vmem:[%s1910_s21 + $0x30] sm:$0xff] }
 0x265   : > { %1665 = vmatpush1.bf16.msra.mxu0 %v1932_v16  ;;  %1695 = vmatpush3.bf16.msra.mxu1 %v1949_v35 }
 0x266   : > { %1667 = vmatprep.subr.bf16.mxu0 %v1935_v17  ;;  %1696 = vmatprep.subr.bf16.mxu1 %v1822_v8 }
 0x269   : > { %1669 = vmatpush1.bf16.msra.mxu0 %v1938_v22  ;;  %1698 = vmatpush3.bf16.msra.mxu1 %v1959_v44 }
 0x26a   : > { %1671 = vmatprep.subr.bf16.mxu0 %v1941_v24  ;;  %1699 = vmatprep.subr.bf16.mxu1 %v1822_v8 }
 0x26d   : > { %1673 = vmatpush1.bf16.msra.mxu0 %v1946_v33  ;;  %1701 = vmatpush3.bf16.msra.mxu1 %v1969_v53 }
 0x26e   : > { %1675 = vmatprep.subr.bf16.mxu0 %v1952_v36  ;;  %1702 = vmatprep.subr.bf16.mxu1 %v1822_v8 }
 0x271   : > { %1677 = vmatpush1.bf16.msra.mxu0 %v1956_v42  ;;  %1704 = vmatpush3.bf16.msra.mxu1 %v1979_v62 }
 0x272   : > { %1679 = vmatprep.subr.bf16.mxu0 %v1962_v45  ;;  %1705 = vmatprep.subr.bf16.mxu1 %v1822_v8 }
 0x275   : > { %1681 = vmatpush1.bf16.msra.mxu0 %v1966_v51  ;;  %1707 = vmatpush3.bf16.msra.mxu1 %v1989_v5  ;;  %v1253_v51 = vld [vmem:[%s1910_s21 + $0x40] sm:$0xff] }
 0x276   : > { %1683 = vmatprep.subr.bf16.mxu0 %v1972_v54  ;;  %1708 = vmatprep.subr.bf16.mxu1 %v1822_v8 }
 0x279   : > { %1685 = vmatpush1.bf16.msra.mxu0 %v1976_v60  ;;  %1710 = vmatpush3.bf16.msra.mxu1 %v2000_v13 }
 0x27a   : > { %1687 = vmatprep.subr.bf16.mxu0 %v1982_v63  ;;  %1711 = vmatprep.subr.bf16.mxu1 %v1822_v8 }
 0x27d   : > { %1689 = vmatpush1.bf16.msra.mxu0 %v1986_v3  ;;  %1713 = vmatpush3.bf16.msra.mxu1 %v2006_v18  ;;  %v1256_v18 = vld [vmem:[%s1910_s21 + $0x48] sm:$0xff] }
 0x333   : > { %v813_v10 = vpop.f32.mrb[4].mxu0  ;;  %v884_v11 = vpop.f32.mrb[4].mxu1 }
 0x334   : > { %v888_v16 = vadd.f32 %v1251_v9, %v813_v10  ;;  %v815_v17 = vpop.f32.mrb[5].mxu0  ;;  %v1454_v22 = vpop.f32.mrb[5].mxu1  ;;  %v902_v44 = vadd.f32 %v2052_v37, %v884_v11 }
 0x335   : > { %v895_v33 = vadd.f32 %v1252_v30, %v815_v17 }
 0x336   : > { %v1254_v24 = vmul.f32 -1.442695, %v888_v16 }
 0x337   : > { %v1255_v35 = vmul.f32 -1.442695, %v895_v33 }
 0x338   : > { %1759 = vpow2.f32 %v1254_v24 }
 0x339   : > { %1761 = vpow2.f32 %v1255_v35 }
 0x342   : > { %v1760_v36 = vpop.eup %1759 }
 0x343   : > { %v892_v42 = vadd.f32 1.0, %v1760_v36  ;;  %v1762_v8 = vpop.eup %1761 }
 0x344   : > { %v899_v60 = vadd.f32 1.0, %v1762_v8 }
 0x345   : > { %1763 = vrcp.f32 %v892_v42 }
 0x34f   : > { %v1764_v45 = vpop.eup %1763 }
 0x350   : > { %v903_v53 = vmul.f32 %v1764_v45, %v902_v44 }
 0x352   : > { %v904_v54 = vadd.f32 %v1253_v51, %v903_v53 }
 0x354   : > { %1765 = vtanh.f32 %v904_v54 }
 0x355   : > { %1767 = vrcp.f32 %v899_v60 }
 0x35e   : > { %v1766_v62 = vpop.eup %1765 }
 0x35f   : > { %v906_v63 = vsub.f32 %v2101_v31, %v1766_v62  ;;  %v1768_v3 = vpop.eup %1767 }
 0x361   : > { %v907_v5 = vmul.f32 %v1768_v3, %v906_v63 }
 0x363   : > { %v908_v13 = vadd.f32 %v1766_v62, %v907_v5 }
 0x365   : > { %1030 = vmatmul.mubr.f32.vlgmr.msra.gmra.mrb[6].mxu0 %v908_v13  ;;  %1488 = vmatmul.mubr.f32.vlgmr.msra.gmra.mrb[6].mxu1 %v908_v13 }
 0x438   : > { %v1031_v34 = vpop.f32.mrb[6].mxu0  ;;  %v1102_v38 = vpop.f32.mrb[6].mxu1 }
 0x439   : > { %v1106_v39 = vadd.f32 %v1256_v18, %v1031_v34  ;;  %v1033_v40 = vpop.f32.mrb[7].mxu0  ;;  %v1489_v41 = vpop.f32.mrb[7].mxu1  ;;  %v1120_v55 = vadd.f32 %v2052_v37, %v1102_v38 }
 0x43a   : > { %v1113_v47 = vadd.f32 %v1257_v46, %v1033_v40 }
 0x43b   : > { %v1259_v43 = vmul.f32 -1.442695, %v1106_v39 }
 0x43c   : > { %v1260_v48 = vmul.f32 -1.442695, %v1113_v47 }
 0x43d   : > { %1769 = vpow2.f32 %v1259_v43 }
 0x43e   : > { %1771 = vpow2.f32 %v1260_v48 }
 0x447   : > { %v1770_v49 = vpop.eup %1769 }
 0x448   : > { %v1110_v50 = vadd.f32 1.0, %v1770_v49  ;;  %v1772_v52 = vpop.eup %1771 }
 0x449   : > { %v1117_v61 = vadd.f32 1.0, %v1772_v52 }
 0x44a   : > { %1773 = vrcp.f32 %v1110_v50 }
 0x454   : > { %v1774_v56 = vpop.eup %1773 }
 0x455   : > { %v1121_v58 = vmul.f32 %v1774_v56, %v1120_v55 }
 0x457   : > { %v1122_v59 = vadd.f32 %v1258_v57, %v1121_v58 }
 0x459   : > { %1775 = vtanh.f32 %v1122_v59 }
 0x45a   : > { %1777 = vrcp.f32 %v1117_v61 }
 0x463   : > { %v1776_v0 = vpop.eup %1775 }
 0x464   : > { %v1124_v1 = vsub.f32 %v908_v13, %v1776_v0  ;;  %v1778_v2 = vpop.eup %1777 }
 0x466   : > { %v1125_v6 = vmul.f32 %v1778_v2, %v1124_v1 }
 0x468   : > { %v1126_v7 = vadd.f32 %v1776_v0, %v1125_v6 }
 0x46a   : > { %1129 = vst [vmem:[%s2162_s5] sm:$0xff] %v1126_v7  ;;  %v1279_v12 = vpack.c.bf16 %v1126_v7, %v908_v13 }
 0x46c   : > { %1281 = vst [vmem:[%s1905_s16 + $0x8] sm:$0xff] %v1279_v12  }
 0x46d PF: > { %s17_s18 = sadd.s32 1, %s1817_s18  }
 0x46e   : > { %p14_p4 = scmp.ge.s32.totalorder %s17_s18, 4  }
 0x470   :  { %16 = sbr.rel (!%p14_p4) target bundleno = 1 (0x1), region = 90 }
 0x477   :  { %1182 = vsyncpa [#allocation4], 1 }
 0x478   :  { %1184 = vsyncpa [#allocation4 + $0x1], 1 }

</bundles_post_ra>
